<compile_context>
chip_gen: v5e
topology: v5e:2x2
jax: 0.10.0
libtpu: 0.0.40
codegen_flags: <defaults>
</compile_context>

<pallas_src>
import functools

import jax
import jax.numpy as jnp
from jax.experimental import pallas as pl
from jax.experimental.pallas import tpu as pltpu


def _round_up(x, m):
    return (x + m - 1) // m * m


def _sigmoid(x):
    # explicit form (f32, EUP exp + divide) for maximally safe Mosaic lowering
    return 1.0 / (1.0 + jnp.exp(-x))


# ---------------------------------------------------------------------------
# Fused kernel: per (batch-block, time-chunk) grid step
#   gates_x = x_chunk @ W_ih^T + (b_ih + b_hh)      (off the serial path)
#   for t in chunk:  h,c = lstm_cell(gates_x[t] + h @ W_hh^T)
#   logits_chunk = h_chunk @ W_out^T + b_out        (lane-dense V-wide store)
# ---------------------------------------------------------------------------
def _decoder_lstm_kernel(x_ref, wih_ref, whh_ref, bg_ref, wout_ref, bout_ref,
                         o_ref, gx_sc, hall_sc, h_sc, c_sc, *,
                         hidden_size, chunk):
    H = hidden_size
    Tc = chunk
    Bb = x_ref.shape[1]
    E = x_ref.shape[2]
    H4 = bg_ref.shape[1]
    V = o_ref.shape[2]

    @pl.when(pl.program_id(1) == 0)
    def _():
        # zero initial hidden/cell state (matches PyTorch default / self.hidden)
        h_sc[...] = jnp.zeros_like(h_sc)
        c_sc[...] = jnp.zeros_like(c_sc)

    # --- hoisted input projection for the whole chunk (one MXU matmul) ---
    x_flat = x_ref[...].reshape(Tc * Bb, E)                     # bf16
    gx = jnp.dot(x_flat, wih_ref[...],
                 preferred_element_type=jnp.float32) + bg_ref[...]   # f32
    gx_sc[...] = gx.reshape(Tc, Bb, H4)

    w_hh = whh_ref[...]                                         # (H, 4H) bf16, resident
    # TODO(synk): pin W_hh in MXU weight regs via pltpu.matmul_push_rhs /
    # matmul_acc_lhs to avoid the per-step RHS re-push on the serial path.

    def step(t, carry):
        h_prev, c_prev = carry                                  # f32 (Bb, H)
        gates = gx_sc[t] + jnp.dot(h_prev.astype(jnp.bfloat16), w_hh,
                                   preferred_element_type=jnp.float32)
        i_g = _sigmoid(gates[:, 0 * H:1 * H])
        f_g = _sigmoid(gates[:, 1 * H:2 * H])
        g_g = jnp.tanh(gates[:, 2 * H:3 * H])
        o_g = _sigmoid(gates[:, 3 * H:4 * H])
        c_new = f_g * c_prev + i_g * g_g
        h_new = o_g * jnp.tanh(c_new)
        hall_sc[t] = h_new                                      # VMEM scratch, f32
        return h_new, c_new

    h_last, c_last = jax.lax.fori_loop(
        0, Tc, step, (h_sc[...], c_sc[...]), unroll=min(8, Tc))
    h_sc[...] = h_last
    c_sc[...] = c_last

    # --- vocab projection for the whole chunk; single lane-dense store ---
    h_flat = hall_sc[...].reshape(Tc * Bb, H).astype(jnp.bfloat16)
    logits = jnp.dot(h_flat, wout_ref[...],
                     preferred_element_type=jnp.float32) + bout_ref[...]
    o_ref[...] = logits.reshape(Tc, Bb, V).astype(o_ref.dtype)


def decoder_lstm_fused_pallas(x_tbe, w_ih_t, w_hh_t, b_gates, w_out_t, b_out, *,
                              time_chunk=64, batch_block=8):
    """x_tbe: (T, B, E) bf16 time-major; returns logits (T, B, V) f32."""
    T, B, E = x_tbe.shape
    H, H4 = w_hh_t.shape
    V = w_out_t.shape[1]

    Bb = min(batch_block, B)
    Bp = _round_up(B, Bb)
    Tc = min(time_chunk, T)
    Tp = _round_up(T, Tc)

    x = x_tbe
    if (Tp, Bp) != (T, B):
        x = jnp.pad(x, ((0, Tp - T), (0, Bp - B), (0, 0)))

    kernel = functools.partial(_decoder_lstm_kernel, hidden_size=H, chunk=Tc)

    out = pl.pallas_call(
        kernel,
        out_shape=jax.ShapeDtypeStruct((Tp, Bp, V), jnp.float32),
        grid_spec=pltpu.PrefetchScalarGridSpec(
            num_scalar_prefetch=0,
            grid=(Bp // Bb, Tp // Tc),
            in_specs=[
                pl.BlockSpec((Tc, Bb, E), lambda b, t: (t, b, 0)),   # x chunk
                pl.BlockSpec((E, H4), lambda b, t: (0, 0)),          # W_ih^T (resident)
                pl.BlockSpec((H, H4), lambda b, t: (0, 0)),          # W_hh^T (resident)
                pl.BlockSpec((1, H4), lambda b, t: (0, 0)),          # b_ih + b_hh
                pl.BlockSpec((H, V), lambda b, t: (0, 0)),           # W_out^T (resident)
                pl.BlockSpec((1, V), lambda b, t: (0, 0)),           # b_out
            ],
            out_specs=pl.BlockSpec((Tc, Bb, V), lambda b, t: (t, b, 0)),
            scratch_shapes=[
                pltpu.VMEM((Tc, Bb, H4), jnp.float32),   # gates_x for the chunk
                pltpu.VMEM((Tc, Bb, H), jnp.float32),    # h history for the chunk
                pltpu.VMEM((Bb, H), jnp.float32),        # h state (carried over chunks)
                pltpu.VMEM((Bb, H), jnp.float32),        # c state
            ],
        ),
        compiler_params=pltpu.CompilerParams(
            # batch blocks are independent (dual-TC on v7x); time is the true
            # recurrence and must stay sequential.
            dimension_semantics=("parallel", "arbitrary"),
            vmem_limit_bytes=64 * 1024 * 1024,
        ),
    )(x, w_ih_t, w_hh_t, b_gates, w_out_t, b_out)
    return out[:T, :B]


class DecoderRNNPallas:
    """JAX/Pallas port of DecoderRNN.forward (num_layers=1; dropout is a no-op
    for a single-layer nn.LSTM so it is omitted)."""

    def __init__(self, embed_size, hidden_size, vocab_size, batch_size, key):
        self.embed_size = embed_size
        self.hidden_size = hidden_size
        self.vocab_size = vocab_size
        self.batch_size = batch_size

        k = jax.random.split(key, 7)
        s = 0.05
        self.embedding = jax.random.normal(k[0], (vocab_size, embed_size), jnp.float32) * s
        # PyTorch LSTM params: weight_ih (4H, E), weight_hh (4H, H), biases (4H,)
        w_ih = jax.random.normal(k[1], (4 * hidden_size, embed_size), jnp.float32) * s
        w_hh = jax.random.normal(k[2], (4 * hidden_size, hidden_size), jnp.float32) * s
        b_ih = jax.random.normal(k[3], (4 * hidden_size,), jnp.float32) * s
        b_hh = jax.random.normal(k[4], (4 * hidden_size,), jnp.float32) * s
        # nn.Linear: weight (V, H), bias (V,)
        w_lin = jax.random.normal(k[5], (vocab_size, hidden_size), jnp.float32) * s
        b_lin = jax.random.normal(k[6], (vocab_size,), jnp.float32) * s

        # Kernel-layout parameters: MXU operands cast to bf16 ONCE here
        # (f32 accumulation inside the kernels); biases stay f32.
        self.w_ih_bf = jnp.transpose(w_ih).astype(jnp.bfloat16)          # (E, 4H)
        self.w_hh_bf = jnp.transpose(w_hh).astype(jnp.bfloat16)          # (H, 4H)
        self.b_gates = (b_ih + b_hh).reshape(1, 4 * hidden_size)         # (1, 4H) f32
        self.w_out_bf = jnp.transpose(w_lin).astype(jnp.bfloat16)        # (H, V)
        self.b_out = b_lin.reshape(1, vocab_size)                        # (1, V) f32

    def forward(self, features, captions):
        # features: (B, E) f32 ; captions: (B, L) int32
        B = self.batch_size
        captions = captions[:, :-1]
        embed = jnp.take(self.embedding, captions, axis=0)        # (B, L-1, E)
        feats = features.reshape(B, 1, -1)                        # (B, 1, E)
        x_bte = jnp.concatenate([feats, embed], axis=1)           # (B, T, E)
        T = x_bte.shape[1]

        # time-major + bf16 for the MXU (transpose the small E-wide tensor)
        x_tbe = jnp.transpose(x_bte, (1, 0, 2)).astype(jnp.bfloat16)   # (T, B, E)

        logits_tbv = decoder_lstm_fused_pallas(
            x_tbe, self.w_ih_bf, self.w_hh_bf, self.b_gates,
            self.w_out_bf, self.b_out)                            # (T, B, V) f32
        return jnp.transpose(logits_tbv, (1, 0, 2))               # (B, T, V)

    # pure-JAX reference with identical bf16-operand / f32-accumulate math
    def forward_ref(self, features, captions):
        B = self.batch_size
        H = self.hidden_size
        captions = captions[:, :-1]
        embed = jnp.take(self.embedding, captions, axis=0)
        feats = features.reshape(B, 1, -1)
        x = jnp.concatenate([feats, embed], axis=1)               # (B, T, E)
        xb = jnp.transpose(x, (1, 0, 2)).astype(jnp.bfloat16)     # (T, B, E)

        def step(carry, x_t):
            h, c = carry
            gates = (jnp.dot(x_t, self.w_ih_bf, preferred_element_type=jnp.float32)
                     + jnp.dot(h.astype(jnp.bfloat16), self.w_hh_bf,
                               preferred_element_type=jnp.float32)
                     + self.b_gates)
            i = _sigmoid(gates[:, 0 * H:1 * H])
            f = _sigmoid(gates[:, 1 * H:2 * H])
            g = jnp.tanh(gates[:, 2 * H:3 * H])
            o = _sigmoid(gates[:, 3 * H:4 * H])
            c = f * c + i * g
            h = o * jnp.tanh(c)
            return (h, c), h.astype(jnp.bfloat16)

        h0 = jnp.zeros((B, H), jnp.float32)
        c0 = jnp.zeros((B, H), jnp.float32)
        _, hs = jax.lax.scan(step, (h0, c0), xb)                  # (T, B, H) bf16
        out = jnp.dot(hs, self.w_out_bf,
                      preferred_element_type=jnp.float32) + self.b_out   # (T, B, V)
        return jnp.transpose(out, (1, 0, 2))                      # (B, T, V)


# TODO(synk): DecoderRNN.sample (greedy decode with a data-dependent Python
# while-loop) is inference-only glue and is not translated here.

if __name__ == "__main__":
    # small shapes consistent with the module; B=8 (full f32 sublane),
    # 4H = V = 128 (lane-aligned), caption length L -> T = L timesteps
    B, E, H, V, L = 8, 32, 32, 128, 8

    key = jax.random.PRNGKey(0)
    k_model, k_feat, k_cap = jax.random.split(key, 3)

    model = DecoderRNNPallas(embed_size=E, hidden_size=H, vocab_size=V,
                             batch_size=B, key=k_model)

    features = jax.random.normal(k_feat, (B, E), jnp.float32)
    captions = jax.random.randint(k_cap, (B, L), 0, V, dtype=jnp.int32)

    out = jax.block_until_ready(model.forward(features, captions))
    ref = jax.block_until_ready(model.forward_ref(features, captions))

    assert out.shape == (B, L, V), out.shape
    assert jnp.allclose(out, ref, atol=2e-3, rtol=2e-3), \
        float(jnp.max(jnp.abs(out - ref)))

    print("KERNEL_OK")
</pallas_src>

<mosaic_0001>
module attributes {stable_mosaic.version = 11 : i64} {
  func.func @_decoder_lstm_kernel(%arg0: i32, %arg1: i32, %arg2: memref<8x8x32xbf16, #tpu.memory_space<vmem>>, %arg3: memref<32x128xbf16, #tpu.memory_space<vmem>>, %arg4: memref<32x128xbf16, #tpu.memory_space<vmem>>, %arg5: memref<1x128xf32, #tpu.memory_space<vmem>>, %arg6: memref<32x128xbf16, #tpu.memory_space<vmem>>, %arg7: memref<1x128xf32, #tpu.memory_space<vmem>>, %arg8: memref<8x8x128xf32, #tpu.memory_space<vmem>>, %arg9: memref<8x8x128xf32, #tpu.memory_space<vmem>>, %arg10: memref<8x8x32xf32, #tpu.memory_space<vmem>>, %arg11: memref<8x32xf32, #tpu.memory_space<vmem>>, %arg12: memref<8x32xf32, #tpu.memory_space<vmem>>) attributes {dimension_semantics = [#tpu.dimension_semantics<parallel>, #tpu.dimension_semantics<arbitrary>], iteration_bounds = array<i64: 1, 1>, scalar_prefetch = 0 : i64, scratch_operands = 4 : i64, tpu.core_type = #tpu.core_type<tc>, window_params = [{transform_indices = @transform_0, window_bounds = array<i64: 8, 8, 32>}, {pipeline_mode = #tpu.pipeline_mode<synchronous>, transform_indices = @transform_1, window_bounds = array<i64: 32, 128>}, {pipeline_mode = #tpu.pipeline_mode<synchronous>, transform_indices = @transform_2, window_bounds = array<i64: 32, 128>}, {pipeline_mode = #tpu.pipeline_mode<synchronous>, transform_indices = @transform_3, window_bounds = array<i64: 1, 128>}, {pipeline_mode = #tpu.pipeline_mode<synchronous>, transform_indices = @transform_4, window_bounds = array<i64: 32, 128>}, {pipeline_mode = #tpu.pipeline_mode<synchronous>, transform_indices = @transform_5, window_bounds = array<i64: 1, 128>}, {transform_indices = @transform_6, window_bounds = array<i64: 8, 8, 128>}]} {
    %c0_i32 = arith.constant 0 : i32
    %0 = arith.cmpi eq, %arg1, %c0_i32 : i32
    %1 = arith.extui %0 : i1 to i32
    %c0_i32_0 = arith.constant 0 : i32
    %2 = arith.cmpi ne, %1, %c0_i32_0 : i32
    scf.if %2 {
      %cst_144 = arith.constant 0.000000e+00 : f32
      %355 = vector.broadcast %cst_144 : f32 to vector<8x32xf32>
      %c0_145 = arith.constant 0 : index
      %c0_146 = arith.constant 0 : index
      %356 = vector.load %arg11[%c0_145, %c0_146] : memref<8x32xf32, #tpu.memory_space<vmem>>, vector<8x32xf32>
      tpu.vector_store %arg11[%c0_145, %c0_146], %355 {strides = array<i32>} : memref<8x32xf32, #tpu.memory_space<vmem>>, vector<8x32xf32>,
      %cst_147 = arith.constant 0.000000e+00 : f32
      %357 = vector.broadcast %cst_147 : f32 to vector<8x32xf32>
      %c0_148 = arith.constant 0 : index
      %c0_149 = arith.constant 0 : index
      %358 = vector.load %arg12[%c0_148, %c0_149] : memref<8x32xf32, #tpu.memory_space<vmem>>, vector<8x32xf32>
      tpu.vector_store %arg12[%c0_148, %c0_149], %357 {strides = array<i32>} : memref<8x32xf32, #tpu.memory_space<vmem>>, vector<8x32xf32>,
    } else {
    }
    %c0 = arith.constant 0 : index
    %c0_1 = arith.constant 0 : index
    %c0_2 = arith.constant 0 : index
    %3 = vector.load %arg2[%c0, %c0_1, %c0_2] : memref<8x8x32xbf16, #tpu.memory_space<vmem>>, vector<8x8x32xbf16>
    %4 = vector.shape_cast %3 : vector<8x8x32xbf16> to vector<64x32xbf16>
    %c0_3 = arith.constant 0 : index
    %c0_4 = arith.constant 0 : index
    %5 = vector.load %arg3[%c0_3, %c0_4] : memref<32x128xbf16, #tpu.memory_space<vmem>>, vector<32x128xbf16>
    %cst = arith.constant dense<0.000000e+00> : vector<64x128xf32>
    %6 = tpu.matmul %4, %5, %cst {dimension_numbers = #tpu.dot_dimension_numbers<[1], [0], [0], [1], [0, 0, 1, 1], [], []>} : vector<64x32xbf16>, vector<32x128xbf16>, vector<64x128xf32> -> vector<64x128xf32>
    %c0_5 = arith.constant 0 : index
    %c0_6 = arith.constant 0 : index
    %7 = vector.load %arg5[%c0_5, %c0_6] : memref<1x128xf32, #tpu.memory_space<vmem>>, vector<1x128xf32>
    %8 = vector.broadcast %7 : vector<1x128xf32> to vector<64x128xf32>
    %9 = arith.addf %6, %8 : vector<64x128xf32>
    %10 = vector.shape_cast %9 : vector<64x128xf32> to vector<8x8x128xf32>
    %c0_7 = arith.constant 0 : index
    %c0_8 = arith.constant 0 : index
    %c0_9 = arith.constant 0 : index
    %11 = vector.load %arg9[%c0_7, %c0_8, %c0_9] : memref<8x8x128xf32, #tpu.memory_space<vmem>>, vector<8x8x128xf32>
    tpu.vector_store %arg9[%c0_7, %c0_8, %c0_9], %10 {strides = array<i32>} : memref<8x8x128xf32, #tpu.memory_space<vmem>>, vector<8x8x128xf32>,
    %c0_10 = arith.constant 0 : index
    %c0_11 = arith.constant 0 : index
    %12 = vector.load %arg4[%c0_10, %c0_11] : memref<32x128xbf16, #tpu.memory_space<vmem>>, vector<32x128xbf16>
    %c0_12 = arith.constant 0 : index
    %c0_13 = arith.constant 0 : index
    %13 = vector.load %arg11[%c0_12, %c0_13] : memref<8x32xf32, #tpu.memory_space<vmem>>, vector<8x32xf32>
    %c0_14 = arith.constant 0 : index
    %c0_15 = arith.constant 0 : index
    %14 = vector.load %arg12[%c0_14, %c0_15] : memref<8x32xf32, #tpu.memory_space<vmem>>, vector<8x32xf32>
    %c0_i32_16 = arith.constant 0 : i32
    %15 = arith.index_cast %c0_i32_16 : i32 to index
    %c0_17 = arith.constant 0 : index
    %c0_18 = arith.constant 0 : index
    %16 = vector.load %arg9[%15, %c0_17, %c0_18] : memref<8x8x128xf32, #tpu.memory_space<vmem>>, vector<1x8x128xf32>
    %17 = vector.shape_cast %16 : vector<1x8x128xf32> to vector<8x128xf32>
    %18 = arith.truncf %13 : vector<8x32xf32> to vector<8x32xbf16>
    %cst_19 = arith.constant dense<0.000000e+00> : vector<8x128xf32>
    %19 = tpu.matmul %18, %12, %cst_19 {dimension_numbers = #tpu.dot_dimension_numbers<[1], [0], [0], [1], [0, 0, 1, 1], [], []>} : vector<8x32xbf16>, vector<32x128xbf16>, vector<8x128xf32> -> vector<8x128xf32>
    %20 = arith.addf %17, %19 : vector<8x128xf32>
    %21 = vector.extract_strided_slice %20 {offsets = [0, 0], sizes = [8, 32], strides = [1, 1]} : vector<8x128xf32> to vector<8x32xf32>
    %cst_20 = arith.constant 0.000000e+00 : f32
    %22 = vector.broadcast %cst_20 : f32 to vector<8x32xf32>
    %23 = arith.subf %22, %21 : vector<8x32xf32>
    %24 = math.exp %23 : vector<8x32xf32>
    %cst_21 = arith.constant 1.000000e+00 : f32
    %25 = vector.broadcast %cst_21 : f32 to vector<8x32xf32>
    %26 = arith.addf %25, %24 : vector<8x32xf32>
    %cst_22 = arith.constant 1.000000e+00 : f32
    %27 = vector.broadcast %cst_22 : f32 to vector<8x32xf32>
    %28 = arith.divf %27, %26 : vector<8x32xf32>
    %29 = vector.extract_strided_slice %20 {offsets = [0, 32], sizes = [8, 32], strides = [1, 1]} : vector<8x128xf32> to vector<8x32xf32>
    %cst_23 = arith.constant 0.000000e+00 : f32
    %30 = vector.broadcast %cst_23 : f32 to vector<8x32xf32>
    %31 = arith.subf %30, %29 : vector<8x32xf32>
    %32 = math.exp %31 : vector<8x32xf32>
    %cst_24 = arith.constant 1.000000e+00 : f32
    %33 = vector.broadcast %cst_24 : f32 to vector<8x32xf32>
    %34 = arith.addf %33, %32 : vector<8x32xf32>
    %cst_25 = arith.constant 1.000000e+00 : f32
    %35 = vector.broadcast %cst_25 : f32 to vector<8x32xf32>
    %36 = arith.divf %35, %34 : vector<8x32xf32>
    %37 = vector.extract_strided_slice %20 {offsets = [0, 64], sizes = [8, 32], strides = [1, 1]} : vector<8x128xf32> to vector<8x32xf32>
    %38 = math.tanh %37 : vector<8x32xf32>
    %39 = vector.extract_strided_slice %20 {offsets = [0, 96], sizes = [8, 32], strides = [1, 1]} : vector<8x128xf32> to vector<8x32xf32>
    %cst_26 = arith.constant 0.000000e+00 : f32
    %40 = vector.broadcast %cst_26 : f32 to vector<8x32xf32>
    %41 = arith.subf %40, %39 : vector<8x32xf32>
    %42 = math.exp %41 : vector<8x32xf32>
    %cst_27 = arith.constant 1.000000e+00 : f32
    %43 = vector.broadcast %cst_27 : f32 to vector<8x32xf32>
    %44 = arith.addf %43, %42 : vector<8x32xf32>
    %cst_28 = arith.constant 1.000000e+00 : f32
    %45 = vector.broadcast %cst_28 : f32 to vector<8x32xf32>
    %46 = arith.divf %45, %44 : vector<8x32xf32>
    %47 = arith.mulf %36, %14 : vector<8x32xf32>
    %48 = arith.mulf %28, %38 : vector<8x32xf32>
    %49 = arith.addf %47, %48 : vector<8x32xf32>
    %50 = math.tanh %49 : vector<8x32xf32>
    %51 = arith.mulf %46, %50 : vector<8x32xf32>
    %52 = arith.index_cast %c0_i32_16 : i32 to index
    %c0_29 = arith.constant 0 : index
    %c0_30 = arith.constant 0 : index
    %53 = vector.load %arg10[%52, %c0_29, %c0_30] : memref<8x8x32xf32, #tpu.memory_space<vmem>>, vector<1x8x32xf32>
    %54 = vector.shape_cast %53 : vector<1x8x32xf32> to vector<8x32xf32>
    %55 = vector.shape_cast %51 : vector<8x32xf32> to vector<1x8x32xf32>
    tpu.vector_store %arg10[%52, %c0_29, %c0_30], %55 {strides = array<i32>} : memref<8x8x32xf32, #tpu.memory_space<vmem>>, vector<1x8x32xf32>,
    %c1_i32 = arith.constant 1 : i32
    %56 = arith.index_cast %c1_i32 : i32 to index
    %c0_31 = arith.constant 0 : index
    %c0_32 = arith.constant 0 : index
    %57 = vector.load %arg9[%56, %c0_31, %c0_32] : memref<8x8x128xf32, #tpu.memory_space<vmem>>, vector<1x8x128xf32>
    %58 = vector.shape_cast %57 : vector<1x8x128xf32> to vector<8x128xf32>
    %59 = arith.truncf %51 : vector<8x32xf32> to vector<8x32xbf16>
    %cst_33 = arith.constant dense<0.000000e+00> : vector<8x128xf32>
    %60 = tpu.matmul %59, %12, %cst_33 {dimension_numbers = #tpu.dot_dimension_numbers<[1], [0], [0], [1], [0, 0, 1, 1], [], []>} : vector<8x32xbf16>, vector<32x128xbf16>, vector<8x128xf32> -> vector<8x128xf32>
    %61 = arith.addf %58, %60 : vector<8x128xf32>
    %62 = vector.extract_strided_slice %61 {offsets = [0, 0], sizes = [8, 32], strides = [1, 1]} : vector<8x128xf32> to vector<8x32xf32>
    %cst_34 = arith.constant 0.000000e+00 : f32
    %63 = vector.broadcast %cst_34 : f32 to vector<8x32xf32>
    %64 = arith.subf %63, %62 : vector<8x32xf32>
    %65 = math.exp %64 : vector<8x32xf32>
    %cst_35 = arith.constant 1.000000e+00 : f32
    %66 = vector.broadcast %cst_35 : f32 to vector<8x32xf32>
    %67 = arith.addf %66, %65 : vector<8x32xf32>
    %cst_36 = arith.constant 1.000000e+00 : f32
    %68 = vector.broadcast %cst_36 : f32 to vector<8x32xf32>
    %69 = arith.divf %68, %67 : vector<8x32xf32>
    %70 = vector.extract_strided_slice %61 {offsets = [0, 32], sizes = [8, 32], strides = [1, 1]} : vector<8x128xf32> to vector<8x32xf32>
    %cst_37 = arith.constant 0.000000e+00 : f32
    %71 = vector.broadcast %cst_37 : f32 to vector<8x32xf32>
    %72 = arith.subf %71, %70 : vector<8x32xf32>
    %73 = math.exp %72 : vector<8x32xf32>
    %cst_38 = arith.constant 1.000000e+00 : f32
    %74 = vector.broadcast %cst_38 : f32 to vector<8x32xf32>
    %75 = arith.addf %74, %73 : vector<8x32xf32>
    %cst_39 = arith.constant 1.000000e+00 : f32
    %76 = vector.broadcast %cst_39 : f32 to vector<8x32xf32>
    %77 = arith.divf %76, %75 : vector<8x32xf32>
    %78 = vector.extract_strided_slice %61 {offsets = [0, 64], sizes = [8, 32], strides = [1, 1]} : vector<8x128xf32> to vector<8x32xf32>
    %79 = math.tanh %78 : vector<8x32xf32>
    %80 = vector.extract_strided_slice %61 {offsets = [0, 96], sizes = [8, 32], strides = [1, 1]} : vector<8x128xf32> to vector<8x32xf32>
    %cst_40 = arith.constant 0.000000e+00 : f32
    %81 = vector.broadcast %cst_40 : f32 to vector<8x32xf32>
    %82 = arith.subf %81, %80 : vector<8x32xf32>
    %83 = math.exp %82 : vector<8x32xf32>
    %cst_41 = arith.constant 1.000000e+00 : f32
    %84 = vector.broadcast %cst_41 : f32 to vector<8x32xf32>
    %85 = arith.addf %84, %83 : vector<8x32xf32>
    %cst_42 = arith.constant 1.000000e+00 : f32
    %86 = vector.broadcast %cst_42 : f32 to vector<8x32xf32>
    %87 = arith.divf %86, %85 : vector<8x32xf32>
    %88 = arith.mulf %77, %49 : vector<8x32xf32>
    %89 = arith.mulf %69, %79 : vector<8x32xf32>
    %90 = arith.addf %88, %89 : vector<8x32xf32>
    %91 = math.tanh %90 : vector<8x32xf32>
    %92 = arith.mulf %87, %91 : vector<8x32xf32>
    %93 = arith.index_cast %c1_i32 : i32 to index
    %c0_43 = arith.constant 0 : index
    %c0_44 = arith.constant 0 : index
    %94 = vector.load %arg10[%93, %c0_43, %c0_44] : memref<8x8x32xf32, #tpu.memory_space<vmem>>, vector<1x8x32xf32>
    %95 = vector.shape_cast %94 : vector<1x8x32xf32> to vector<8x32xf32>
    %96 = vector.shape_cast %92 : vector<8x32xf32> to vector<1x8x32xf32>
    tpu.vector_store %arg10[%93, %c0_43, %c0_44], %96 {strides = array<i32>} : memref<8x8x32xf32, #tpu.memory_space<vmem>>, vector<1x8x32xf32>,
    %c2_i32 = arith.constant 2 : i32
    %97 = arith.index_cast %c2_i32 : i32 to index
    %c0_45 = arith.constant 0 : index
    %c0_46 = arith.constant 0 : index
    %98 = vector.load %arg9[%97, %c0_45, %c0_46] : memref<8x8x128xf32, #tpu.memory_space<vmem>>, vector<1x8x128xf32>
    %99 = vector.shape_cast %98 : vector<1x8x128xf32> to vector<8x128xf32>
    %100 = arith.truncf %92 : vector<8x32xf32> to vector<8x32xbf16>
    %cst_47 = arith.constant dense<0.000000e+00> : vector<8x128xf32>
    %101 = tpu.matmul %100, %12, %cst_47 {dimension_numbers = #tpu.dot_dimension_numbers<[1], [0], [0], [1], [0, 0, 1, 1], [], []>} : vector<8x32xbf16>, vector<32x128xbf16>, vector<8x128xf32> -> vector<8x128xf32>
    %102 = arith.addf %99, %101 : vector<8x128xf32>
    %103 = vector.extract_strided_slice %102 {offsets = [0, 0], sizes = [8, 32], strides = [1, 1]} : vector<8x128xf32> to vector<8x32xf32>
    %cst_48 = arith.constant 0.000000e+00 : f32
    %104 = vector.broadcast %cst_48 : f32 to vector<8x32xf32>
    %105 = arith.subf %104, %103 : vector<8x32xf32>
    %106 = math.exp %105 : vector<8x32xf32>
    %cst_49 = arith.constant 1.000000e+00 : f32
    %107 = vector.broadcast %cst_49 : f32 to vector<8x32xf32>
    %108 = arith.addf %107, %106 : vector<8x32xf32>
    %cst_50 = arith.constant 1.000000e+00 : f32
    %109 = vector.broadcast %cst_50 : f32 to vector<8x32xf32>
    %110 = arith.divf %109, %108 : vector<8x32xf32>
    %111 = vector.extract_strided_slice %102 {offsets = [0, 32], sizes = [8, 32], strides = [1, 1]} : vector<8x128xf32> to vector<8x32xf32>
    %cst_51 = arith.constant 0.000000e+00 : f32
    %112 = vector.broadcast %cst_51 : f32 to vector<8x32xf32>
    %113 = arith.subf %112, %111 : vector<8x32xf32>
    %114 = math.exp %113 : vector<8x32xf32>
    %cst_52 = arith.constant 1.000000e+00 : f32
    %115 = vector.broadcast %cst_52 : f32 to vector<8x32xf32>
    %116 = arith.addf %115, %114 : vector<8x32xf32>
    %cst_53 = arith.constant 1.000000e+00 : f32
    %117 = vector.broadcast %cst_53 : f32 to vector<8x32xf32>
    %118 = arith.divf %117, %116 : vector<8x32xf32>
    %119 = vector.extract_strided_slice %102 {offsets = [0, 64], sizes = [8, 32], strides = [1, 1]} : vector<8x128xf32> to vector<8x32xf32>
    %120 = math.tanh %119 : vector<8x32xf32>
    %121 = vector.extract_strided_slice %102 {offsets = [0, 96], sizes = [8, 32], strides = [1, 1]} : vector<8x128xf32> to vector<8x32xf32>
    %cst_54 = arith.constant 0.000000e+00 : f32
    %122 = vector.broadcast %cst_54 : f32 to vector<8x32xf32>
    %123 = arith.subf %122, %121 : vector<8x32xf32>
    %124 = math.exp %123 : vector<8x32xf32>
    %cst_55 = arith.constant 1.000000e+00 : f32
    %125 = vector.broadcast %cst_55 : f32 to vector<8x32xf32>
    %126 = arith.addf %125, %124 : vector<8x32xf32>
    %cst_56 = arith.constant 1.000000e+00 : f32
    %127 = vector.broadcast %cst_56 : f32 to vector<8x32xf32>
    %128 = arith.divf %127, %126 : vector<8x32xf32>
    %129 = arith.mulf %118, %90 : vector<8x32xf32>
    %130 = arith.mulf %110, %120 : vector<8x32xf32>
    %131 = arith.addf %129, %130 : vector<8x32xf32>
    %132 = math.tanh %131 : vector<8x32xf32>
    %133 = arith.mulf %128, %132 : vector<8x32xf32>
    %134 = arith.index_cast %c2_i32 : i32 to index
    %c0_57 = arith.constant 0 : index
    %c0_58 = arith.constant 0 : index
    %135 = vector.load %arg10[%134, %c0_57, %c0_58] : memref<8x8x32xf32, #tpu.memory_space<vmem>>, vector<1x8x32xf32>
    %136 = vector.shape_cast %135 : vector<1x8x32xf32> to vector<8x32xf32>
    %137 = vector.shape_cast %133 : vector<8x32xf32> to vector<1x8x32xf32>
    tpu.vector_store %arg10[%134, %c0_57, %c0_58], %137 {strides = array<i32>} : memref<8x8x32xf32, #tpu.memory_space<vmem>>, vector<1x8x32xf32>,
    %c3_i32 = arith.constant 3 : i32
    %138 = arith.index_cast %c3_i32 : i32 to index
    %c0_59 = arith.constant 0 : index
    %c0_60 = arith.constant 0 : index
    %139 = vector.load %arg9[%138, %c0_59, %c0_60] : memref<8x8x128xf32, #tpu.memory_space<vmem>>, vector<1x8x128xf32>
    %140 = vector.shape_cast %139 : vector<1x8x128xf32> to vector<8x128xf32>
    %141 = arith.truncf %133 : vector<8x32xf32> to vector<8x32xbf16>
    %cst_61 = arith.constant dense<0.000000e+00> : vector<8x128xf32>
    %142 = tpu.matmul %141, %12, %cst_61 {dimension_numbers = #tpu.dot_dimension_numbers<[1], [0], [0], [1], [0, 0, 1, 1], [], []>} : vector<8x32xbf16>, vector<32x128xbf16>, vector<8x128xf32> -> vector<8x128xf32>
    %143 = arith.addf %140, %142 : vector<8x128xf32>
    %144 = vector.extract_strided_slice %143 {offsets = [0, 0], sizes = [8, 32], strides = [1, 1]} : vector<8x128xf32> to vector<8x32xf32>
    %cst_62 = arith.constant 0.000000e+00 : f32
    %145 = vector.broadcast %cst_62 : f32 to vector<8x32xf32>
    %146 = arith.subf %145, %144 : vector<8x32xf32>
    %147 = math.exp %146 : vector<8x32xf32>
    %cst_63 = arith.constant 1.000000e+00 : f32
    %148 = vector.broadcast %cst_63 : f32 to vector<8x32xf32>
    %149 = arith.addf %148, %147 : vector<8x32xf32>
    %cst_64 = arith.constant 1.000000e+00 : f32
    %150 = vector.broadcast %cst_64 : f32 to vector<8x32xf32>
    %151 = arith.divf %150, %149 : vector<8x32xf32>
    %152 = vector.extract_strided_slice %143 {offsets = [0, 32], sizes = [8, 32], strides = [1, 1]} : vector<8x128xf32> to vector<8x32xf32>
    %cst_65 = arith.constant 0.000000e+00 : f32
    %153 = vector.broadcast %cst_65 : f32 to vector<8x32xf32>
    %154 = arith.subf %153, %152 : vector<8x32xf32>
    %155 = math.exp %154 : vector<8x32xf32>
    %cst_66 = arith.constant 1.000000e+00 : f32
    %156 = vector.broadcast %cst_66 : f32 to vector<8x32xf32>
    %157 = arith.addf %156, %155 : vector<8x32xf32>
    %cst_67 = arith.constant 1.000000e+00 : f32
    %158 = vector.broadcast %cst_67 : f32 to vector<8x32xf32>
    %159 = arith.divf %158, %157 : vector<8x32xf32>
    %160 = vector.extract_strided_slice %143 {offsets = [0, 64], sizes = [8, 32], strides = [1, 1]} : vector<8x128xf32> to vector<8x32xf32>
    %161 = math.tanh %160 : vector<8x32xf32>
    %162 = vector.extract_strided_slice %143 {offsets = [0, 96], sizes = [8, 32], strides = [1, 1]} : vector<8x128xf32> to vector<8x32xf32>
    %cst_68 = arith.constant 0.000000e+00 : f32
    %163 = vector.broadcast %cst_68 : f32 to vector<8x32xf32>
    %164 = arith.subf %163, %162 : vector<8x32xf32>
    %165 = math.exp %164 : vector<8x32xf32>
    %cst_69 = arith.constant 1.000000e+00 : f32
    %166 = vector.broadcast %cst_69 : f32 to vector<8x32xf32>
    %167 = arith.addf %166, %165 : vector<8x32xf32>
    %cst_70 = arith.constant 1.000000e+00 : f32
    %168 = vector.broadcast %cst_70 : f32 to vector<8x32xf32>
    %169 = arith.divf %168, %167 : vector<8x32xf32>
    %170 = arith.mulf %159, %131 : vector<8x32xf32>
    %171 = arith.mulf %151, %161 : vector<8x32xf32>
    %172 = arith.addf %170, %171 : vector<8x32xf32>
    %173 = math.tanh %172 : vector<8x32xf32>
    %174 = arith.mulf %169, %173 : vector<8x32xf32>
    %175 = arith.index_cast %c3_i32 : i32 to index
    %c0_71 = arith.constant 0 : index
    %c0_72 = arith.constant 0 : index
    %176 = vector.load %arg10[%175, %c0_71, %c0_72] : memref<8x8x32xf32, #tpu.memory_space<vmem>>, vector<1x8x32xf32>
    %177 = vector.shape_cast %176 : vector<1x8x32xf32> to vector<8x32xf32>
    %178 = vector.shape_cast %174 : vector<8x32xf32> to vector<1x8x32xf32>
    tpu.vector_store %arg10[%175, %c0_71, %c0_72], %178 {strides = array<i32>} : memref<8x8x32xf32, #tpu.memory_space<vmem>>, vector<1x8x32xf32>,
    %c4_i32 = arith.constant 4 : i32
    %179 = arith.index_cast %c4_i32 : i32 to index
    %c0_73 = arith.constant 0 : index
    %c0_74 = arith.constant 0 : index
    %180 = vector.load %arg9[%179, %c0_73, %c0_74] : memref<8x8x128xf32, #tpu.memory_space<vmem>>, vector<1x8x128xf32>
    %181 = vector.shape_cast %180 : vector<1x8x128xf32> to vector<8x128xf32>
    %182 = arith.truncf %174 : vector<8x32xf32> to vector<8x32xbf16>
    %cst_75 = arith.constant dense<0.000000e+00> : vector<8x128xf32>
    %183 = tpu.matmul %182, %12, %cst_75 {dimension_numbers = #tpu.dot_dimension_numbers<[1], [0], [0], [1], [0, 0, 1, 1], [], []>} : vector<8x32xbf16>, vector<32x128xbf16>, vector<8x128xf32> -> vector<8x128xf32>
    %184 = arith.addf %181, %183 : vector<8x128xf32>
    %185 = vector.extract_strided_slice %184 {offsets = [0, 0], sizes = [8, 32], strides = [1, 1]} : vector<8x128xf32> to vector<8x32xf32>
    %cst_76 = arith.constant 0.000000e+00 : f32
    %186 = vector.broadcast %cst_76 : f32 to vector<8x32xf32>
    %187 = arith.subf %186, %185 : vector<8x32xf32>
    %188 = math.exp %187 : vector<8x32xf32>
    %cst_77 = arith.constant 1.000000e+00 : f32
    %189 = vector.broadcast %cst_77 : f32 to vector<8x32xf32>
    %190 = arith.addf %189, %188 : vector<8x32xf32>
    %cst_78 = arith.constant 1.000000e+00 : f32
    %191 = vector.broadcast %cst_78 : f32 to vector<8x32xf32>
    %192 = arith.divf %191, %190 : vector<8x32xf32>
    %193 = vector.extract_strided_slice %184 {offsets = [0, 32], sizes = [8, 32], strides = [1, 1]} : vector<8x128xf32> to vector<8x32xf32>
    %cst_79 = arith.constant 0.000000e+00 : f32
    %194 = vector.broadcast %cst_79 : f32 to vector<8x32xf32>
    %195 = arith.subf %194, %193 : vector<8x32xf32>
    %196 = math.exp %195 : vector<8x32xf32>
    %cst_80 = arith.constant 1.000000e+00 : f32
    %197 = vector.broadcast %cst_80 : f32 to vector<8x32xf32>
    %198 = arith.addf %197, %196 : vector<8x32xf32>
    %cst_81 = arith.constant 1.000000e+00 : f32
    %199 = vector.broadcast %cst_81 : f32 to vector<8x32xf32>
    %200 = arith.divf %199, %198 : vector<8x32xf32>
    %201 = vector.extract_strided_slice %184 {offsets = [0, 64], sizes = [8, 32], strides = [1, 1]} : vector<8x128xf32> to vector<8x32xf32>
    %202 = math.tanh %201 : vector<8x32xf32>
    %203 = vector.extract_strided_slice %184 {offsets = [0, 96], sizes = [8, 32], strides = [1, 1]} : vector<8x128xf32> to vector<8x32xf32>
    %cst_82 = arith.constant 0.000000e+00 : f32
    %204 = vector.broadcast %cst_82 : f32 to vector<8x32xf32>
    %205 = arith.subf %204, %203 : vector<8x32xf32>
    %206 = math.exp %205 : vector<8x32xf32>
    %cst_83 = arith.constant 1.000000e+00 : f32
    %207 = vector.broadcast %cst_83 : f32 to vector<8x32xf32>
    %208 = arith.addf %207, %206 : vector<8x32xf32>
    %cst_84 = arith.constant 1.000000e+00 : f32
    %209 = vector.broadcast %cst_84 : f32 to vector<8x32xf32>
    %210 = arith.divf %209, %208 : vector<8x32xf32>
    %211 = arith.mulf %200, %172 : vector<8x32xf32>
    %212 = arith.mulf %192, %202 : vector<8x32xf32>
    %213 = arith.addf %211, %212 : vector<8x32xf32>
    %214 = math.tanh %213 : vector<8x32xf32>
    %215 = arith.mulf %210, %214 : vector<8x32xf32>
    %216 = arith.index_cast %c4_i32 : i32 to index
    %c0_85 = arith.constant 0 : index
    %c0_86 = arith.constant 0 : index
    %217 = vector.load %arg10[%216, %c0_85, %c0_86] : memref<8x8x32xf32, #tpu.memory_space<vmem>>, vector<1x8x32xf32>
    %218 = vector.shape_cast %217 : vector<1x8x32xf32> to vector<8x32xf32>
    %219 = vector.shape_cast %215 : vector<8x32xf32> to vector<1x8x32xf32>
    tpu.vector_store %arg10[%216, %c0_85, %c0_86], %219 {strides = array<i32>} : memref<8x8x32xf32, #tpu.memory_space<vmem>>, vector<1x8x32xf32>,
    %c5_i32 = arith.constant 5 : i32
    %220 = arith.index_cast %c5_i32 : i32 to index
    %c0_87 = arith.constant 0 : index
    %c0_88 = arith.constant 0 : index
    %221 = vector.load %arg9[%220, %c0_87, %c0_88] : memref<8x8x128xf32, #tpu.memory_space<vmem>>, vector<1x8x128xf32>
    %222 = vector.shape_cast %221 : vector<1x8x128xf32> to vector<8x128xf32>
    %223 = arith.truncf %215 : vector<8x32xf32> to vector<8x32xbf16>
    %cst_89 = arith.constant dense<0.000000e+00> : vector<8x128xf32>
    %224 = tpu.matmul %223, %12, %cst_89 {dimension_numbers = #tpu.dot_dimension_numbers<[1], [0], [0], [1], [0, 0, 1, 1], [], []>} : vector<8x32xbf16>, vector<32x128xbf16>, vector<8x128xf32> -> vector<8x128xf32>
    %225 = arith.addf %222, %224 : vector<8x128xf32>
    %226 = vector.extract_strided_slice %225 {offsets = [0, 0], sizes = [8, 32], strides = [1, 1]} : vector<8x128xf32> to vector<8x32xf32>
    %cst_90 = arith.constant 0.000000e+00 : f32
    %227 = vector.broadcast %cst_90 : f32 to vector<8x32xf32>
    %228 = arith.subf %227, %226 : vector<8x32xf32>
    %229 = math.exp %228 : vector<8x32xf32>
    %cst_91 = arith.constant 1.000000e+00 : f32
    %230 = vector.broadcast %cst_91 : f32 to vector<8x32xf32>
    %231 = arith.addf %230, %229 : vector<8x32xf32>
    %cst_92 = arith.constant 1.000000e+00 : f32
    %232 = vector.broadcast %cst_92 : f32 to vector<8x32xf32>
    %233 = arith.divf %232, %231 : vector<8x32xf32>
    %234 = vector.extract_strided_slice %225 {offsets = [0, 32], sizes = [8, 32], strides = [1, 1]} : vector<8x128xf32> to vector<8x32xf32>
    %cst_93 = arith.constant 0.000000e+00 : f32
    %235 = vector.broadcast %cst_93 : f32 to vector<8x32xf32>
    %236 = arith.subf %235, %234 : vector<8x32xf32>
    %237 = math.exp %236 : vector<8x32xf32>
    %cst_94 = arith.constant 1.000000e+00 : f32
    %238 = vector.broadcast %cst_94 : f32 to vector<8x32xf32>
    %239 = arith.addf %238, %237 : vector<8x32xf32>
    %cst_95 = arith.constant 1.000000e+00 : f32
    %240 = vector.broadcast %cst_95 : f32 to vector<8x32xf32>
    %241 = arith.divf %240, %239 : vector<8x32xf32>
    %242 = vector.extract_strided_slice %225 {offsets = [0, 64], sizes = [8, 32], strides = [1, 1]} : vector<8x128xf32> to vector<8x32xf32>
    %243 = math.tanh %242 : vector<8x32xf32>
    %244 = vector.extract_strided_slice %225 {offsets = [0, 96], sizes = [8, 32], strides = [1, 1]} : vector<8x128xf32> to vector<8x32xf32>
    %cst_96 = arith.constant 0.000000e+00 : f32
    %245 = vector.broadcast %cst_96 : f32 to vector<8x32xf32>
    %246 = arith.subf %245, %244 : vector<8x32xf32>
    %247 = math.exp %246 : vector<8x32xf32>
    %cst_97 = arith.constant 1.000000e+00 : f32
    %248 = vector.broadcast %cst_97 : f32 to vector<8x32xf32>
    %249 = arith.addf %248, %247 : vector<8x32xf32>
    %cst_98 = arith.constant 1.000000e+00 : f32
    %250 = vector.broadcast %cst_98 : f32 to vector<8x32xf32>
    %251 = arith.divf %250, %249 : vector<8x32xf32>
    %252 = arith.mulf %241, %213 : vector<8x32xf32>
    %253 = arith.mulf %233, %243 : vector<8x32xf32>
    %254 = arith.addf %252, %253 : vector<8x32xf32>
    %255 = math.tanh %254 : vector<8x32xf32>
    %256 = arith.mulf %251, %255 : vector<8x32xf32>
    %257 = arith.index_cast %c5_i32 : i32 to index
    %c0_99 = arith.constant 0 : index
    %c0_100 = arith.constant 0 : index
    %258 = vector.load %arg10[%257, %c0_99, %c0_100] : memref<8x8x32xf32, #tpu.memory_space<vmem>>, vector<1x8x32xf32>
    %259 = vector.shape_cast %258 : vector<1x8x32xf32> to vector<8x32xf32>
    %260 = vector.shape_cast %256 : vector<8x32xf32> to vector<1x8x32xf32>
    tpu.vector_store %arg10[%257, %c0_99, %c0_100], %260 {strides = array<i32>} : memref<8x8x32xf32, #tpu.memory_space<vmem>>, vector<1x8x32xf32>,
    %c6_i32 = arith.constant 6 : i32
    %261 = arith.index_cast %c6_i32 : i32 to index
    %c0_101 = arith.constant 0 : index
    %c0_102 = arith.constant 0 : index
    %262 = vector.load %arg9[%261, %c0_101, %c0_102] : memref<8x8x128xf32, #tpu.memory_space<vmem>>, vector<1x8x128xf32>
    %263 = vector.shape_cast %262 : vector<1x8x128xf32> to vector<8x128xf32>
    %264 = arith.truncf %256 : vector<8x32xf32> to vector<8x32xbf16>
    %cst_103 = arith.constant dense<0.000000e+00> : vector<8x128xf32>
    %265 = tpu.matmul %264, %12, %cst_103 {dimension_numbers = #tpu.dot_dimension_numbers<[1], [0], [0], [1], [0, 0, 1, 1], [], []>} : vector<8x32xbf16>, vector<32x128xbf16>, vector<8x128xf32> -> vector<8x128xf32>
    %266 = arith.addf %263, %265 : vector<8x128xf32>
    %267 = vector.extract_strided_slice %266 {offsets = [0, 0], sizes = [8, 32], strides = [1, 1]} : vector<8x128xf32> to vector<8x32xf32>
    %cst_104 = arith.constant 0.000000e+00 : f32
    %268 = vector.broadcast %cst_104 : f32 to vector<8x32xf32>
    %269 = arith.subf %268, %267 : vector<8x32xf32>
    %270 = math.exp %269 : vector<8x32xf32>
    %cst_105 = arith.constant 1.000000e+00 : f32
    %271 = vector.broadcast %cst_105 : f32 to vector<8x32xf32>
    %272 = arith.addf %271, %270 : vector<8x32xf32>
    %cst_106 = arith.constant 1.000000e+00 : f32
    %273 = vector.broadcast %cst_106 : f32 to vector<8x32xf32>
    %274 = arith.divf %273, %272 : vector<8x32xf32>
    %275 = vector.extract_strided_slice %266 {offsets = [0, 32], sizes = [8, 32], strides = [1, 1]} : vector<8x128xf32> to vector<8x32xf32>
    %cst_107 = arith.constant 0.000000e+00 : f32
    %276 = vector.broadcast %cst_107 : f32 to vector<8x32xf32>
    %277 = arith.subf %276, %275 : vector<8x32xf32>
    %278 = math.exp %277 : vector<8x32xf32>
    %cst_108 = arith.constant 1.000000e+00 : f32
    %279 = vector.broadcast %cst_108 : f32 to vector<8x32xf32>
    %280 = arith.addf %279, %278 : vector<8x32xf32>
    %cst_109 = arith.constant 1.000000e+00 : f32
    %281 = vector.broadcast %cst_109 : f32 to vector<8x32xf32>
    %282 = arith.divf %281, %280 : vector<8x32xf32>
    %283 = vector.extract_strided_slice %266 {offsets = [0, 64], sizes = [8, 32], strides = [1, 1]} : vector<8x128xf32> to vector<8x32xf32>
    %284 = math.tanh %283 : vector<8x32xf32>
    %285 = vector.extract_strided_slice %266 {offsets = [0, 96], sizes = [8, 32], strides = [1, 1]} : vector<8x128xf32> to vector<8x32xf32>
    %cst_110 = arith.constant 0.000000e+00 : f32
    %286 = vector.broadcast %cst_110 : f32 to vector<8x32xf32>
    %287 = arith.subf %286, %285 : vector<8x32xf32>
    %288 = math.exp %287 : vector<8x32xf32>
    %cst_111 = arith.constant 1.000000e+00 : f32
    %289 = vector.broadcast %cst_111 : f32 to vector<8x32xf32>
    %290 = arith.addf %289, %288 : vector<8x32xf32>
    %cst_112 = arith.constant 1.000000e+00 : f32
    %291 = vector.broadcast %cst_112 : f32 to vector<8x32xf32>
    %292 = arith.divf %291, %290 : vector<8x32xf32>
    %293 = arith.mulf %282, %254 : vector<8x32xf32>
    %294 = arith.mulf %274, %284 : vector<8x32xf32>
    %295 = arith.addf %293, %294 : vector<8x32xf32>
    %296 = math.tanh %295 : vector<8x32xf32>
    %297 = arith.mulf %292, %296 : vector<8x32xf32>
    %298 = arith.index_cast %c6_i32 : i32 to index
    %c0_113 = arith.constant 0 : index
    %c0_114 = arith.constant 0 : index
    %299 = vector.load %arg10[%298, %c0_113, %c0_114] : memref<8x8x32xf32, #tpu.memory_space<vmem>>, vector<1x8x32xf32>
    %300 = vector.shape_cast %299 : vector<1x8x32xf32> to vector<8x32xf32>
    %301 = vector.shape_cast %297 : vector<8x32xf32> to vector<1x8x32xf32>
    tpu.vector_store %arg10[%298, %c0_113, %c0_114], %301 {strides = array<i32>} : memref<8x8x32xf32, #tpu.memory_space<vmem>>, vector<1x8x32xf32>,
    %c7_i32 = arith.constant 7 : i32
    %302 = arith.index_cast %c7_i32 : i32 to index
    %c0_115 = arith.constant 0 : index
    %c0_116 = arith.constant 0 : index
    %303 = vector.load %arg9[%302, %c0_115, %c0_116] : memref<8x8x128xf32, #tpu.memory_space<vmem>>, vector<1x8x128xf32>
    %304 = vector.shape_cast %303 : vector<1x8x128xf32> to vector<8x128xf32>
    %305 = arith.truncf %297 : vector<8x32xf32> to vector<8x32xbf16>
    %cst_117 = arith.constant dense<0.000000e+00> : vector<8x128xf32>
    %306 = tpu.matmul %305, %12, %cst_117 {dimension_numbers = #tpu.dot_dimension_numbers<[1], [0], [0], [1], [0, 0, 1, 1], [], []>} : vector<8x32xbf16>, vector<32x128xbf16>, vector<8x128xf32> -> vector<8x128xf32>
    %307 = arith.addf %304, %306 : vector<8x128xf32>
    %308 = vector.extract_strided_slice %307 {offsets = [0, 0], sizes = [8, 32], strides = [1, 1]} : vector<8x128xf32> to vector<8x32xf32>
    %cst_118 = arith.constant 0.000000e+00 : f32
    %309 = vector.broadcast %cst_118 : f32 to vector<8x32xf32>
    %310 = arith.subf %309, %308 : vector<8x32xf32>
    %311 = math.exp %310 : vector<8x32xf32>
    %cst_119 = arith.constant 1.000000e+00 : f32
    %312 = vector.broadcast %cst_119 : f32 to vector<8x32xf32>
    %313 = arith.addf %312, %311 : vector<8x32xf32>
    %cst_120 = arith.constant 1.000000e+00 : f32
    %314 = vector.broadcast %cst_120 : f32 to vector<8x32xf32>
    %315 = arith.divf %314, %313 : vector<8x32xf32>
    %316 = vector.extract_strided_slice %307 {offsets = [0, 32], sizes = [8, 32], strides = [1, 1]} : vector<8x128xf32> to vector<8x32xf32>
    %cst_121 = arith.constant 0.000000e+00 : f32
    %317 = vector.broadcast %cst_121 : f32 to vector<8x32xf32>
    %318 = arith.subf %317, %316 : vector<8x32xf32>
    %319 = math.exp %318 : vector<8x32xf32>
    %cst_122 = arith.constant 1.000000e+00 : f32
    %320 = vector.broadcast %cst_122 : f32 to vector<8x32xf32>
    %321 = arith.addf %320, %319 : vector<8x32xf32>
    %cst_123 = arith.constant 1.000000e+00 : f32
    %322 = vector.broadcast %cst_123 : f32 to vector<8x32xf32>
    %323 = arith.divf %322, %321 : vector<8x32xf32>
    %324 = vector.extract_strided_slice %307 {offsets = [0, 64], sizes = [8, 32], strides = [1, 1]} : vector<8x128xf32> to vector<8x32xf32>
    %325 = math.tanh %324 : vector<8x32xf32>
    %326 = vector.extract_strided_slice %307 {offsets = [0, 96], sizes = [8, 32], strides = [1, 1]} : vector<8x128xf32> to vector<8x32xf32>
    %cst_124 = arith.constant 0.000000e+00 : f32
    %327 = vector.broadcast %cst_124 : f32 to vector<8x32xf32>
    %328 = arith.subf %327, %326 : vector<8x32xf32>
    %329 = math.exp %328 : vector<8x32xf32>
    %cst_125 = arith.constant 1.000000e+00 : f32
    %330 = vector.broadcast %cst_125 : f32 to vector<8x32xf32>
    %331 = arith.addf %330, %329 : vector<8x32xf32>
    %cst_126 = arith.constant 1.000000e+00 : f32
    %332 = vector.broadcast %cst_126 : f32 to vector<8x32xf32>
    %333 = arith.divf %332, %331 : vector<8x32xf32>
    %334 = arith.mulf %323, %295 : vector<8x32xf32>
    %335 = arith.mulf %315, %325 : vector<8x32xf32>
    %336 = arith.addf %334, %335 : vector<8x32xf32>
    %337 = math.tanh %336 : vector<8x32xf32>
    %338 = arith.mulf %333, %337 : vector<8x32xf32>
    %339 = arith.index_cast %c7_i32 : i32 to index
    %c0_127 = arith.constant 0 : index
    %c0_128 = arith.constant 0 : index
    %340 = vector.load %arg10[%339, %c0_127, %c0_128] : memref<8x8x32xf32, #tpu.memory_space<vmem>>, vector<1x8x32xf32>
    %341 = vector.shape_cast %340 : vector<1x8x32xf32> to vector<8x32xf32>
    %342 = vector.shape_cast %338 : vector<8x32xf32> to vector<1x8x32xf32>
    tpu.vector_store %arg10[%339, %c0_127, %c0_128], %342 {strides = array<i32>} : memref<8x8x32xf32, #tpu.memory_space<vmem>>, vector<1x8x32xf32>,
    %c8_i32 = arith.constant 8 : i32
    %c0_129 = arith.constant 0 : index
    %c0_130 = arith.constant 0 : index
    %343 = vector.load %arg11[%c0_129, %c0_130] : memref<8x32xf32, #tpu.memory_space<vmem>>, vector<8x32xf32>
    tpu.vector_store %arg11[%c0_129, %c0_130], %338 {strides = array<i32>} : memref<8x32xf32, #tpu.memory_space<vmem>>, vector<8x32xf32>,
    %c0_131 = arith.constant 0 : index
    %c0_132 = arith.constant 0 : index
    %344 = vector.load %arg12[%c0_131, %c0_132] : memref<8x32xf32, #tpu.memory_space<vmem>>, vector<8x32xf32>
    tpu.vector_store %arg12[%c0_131, %c0_132], %336 {strides = array<i32>} : memref<8x32xf32, #tpu.memory_space<vmem>>, vector<8x32xf32>,
    %c0_133 = arith.constant 0 : index
    %c0_134 = arith.constant 0 : index
    %c0_135 = arith.constant 0 : index
    %345 = vector.load %arg10[%c0_133, %c0_134, %c0_135] : memref<8x8x32xf32, #tpu.memory_space<vmem>>, vector<8x8x32xf32>
    %346 = vector.shape_cast %345 : vector<8x8x32xf32> to vector<64x32xf32>
    %347 = arith.truncf %346 : vector<64x32xf32> to vector<64x32xbf16>
    %c0_136 = arith.constant 0 : index
    %c0_137 = arith.constant 0 : index
    %348 = vector.load %arg6[%c0_136, %c0_137] : memref<32x128xbf16, #tpu.memory_space<vmem>>, vector<32x128xbf16>
    %cst_138 = arith.constant dense<0.000000e+00> : vector<64x128xf32>
    %349 = tpu.matmul %347, %348, %cst_138 {dimension_numbers = #tpu.dot_dimension_numbers<[1], [0], [0], [1], [0, 0, 1, 1], [], []>} : vector<64x32xbf16>, vector<32x128xbf16>, vector<64x128xf32> -> vector<64x128xf32>
    %c0_139 = arith.constant 0 : index
    %c0_140 = arith.constant 0 : index
    %350 = vector.load %arg7[%c0_139, %c0_140] : memref<1x128xf32, #tpu.memory_space<vmem>>, vector<1x128xf32>
    %351 = vector.broadcast %350 : vector<1x128xf32> to vector<64x128xf32>
    %352 = arith.addf %349, %351 : vector<64x128xf32>
    %353 = vector.shape_cast %352 : vector<64x128xf32> to vector<8x8x128xf32>
    %c0_141 = arith.constant 0 : index
    %c0_142 = arith.constant 0 : index
    %c0_143 = arith.constant 0 : index
    %354 = vector.load %arg8[%c0_141, %c0_142, %c0_143] : memref<8x8x128xf32, #tpu.memory_space<vmem>>, vector<8x8x128xf32>
    tpu.vector_store %arg8[%c0_141, %c0_142, %c0_143], %353 {strides = array<i32>} : memref<8x8x128xf32, #tpu.memory_space<vmem>>, vector<8x8x128xf32>,
    return
  }
  func.func @transform_0(%arg0: i32, %arg1: i32) -> (i32, i32, i32) {
    %c0_i32 = arith.constant 0 : i32
    %c0_i32_0 = arith.constant 0 : i32
    return %arg1, %arg0, %c0_i32 : i32, i32, i32
  }
  func.func @transform_1(%arg0: i32, %arg1: i32) -> (i32, i32) {
    %c0_i32 = arith.constant 0 : i32
    %c0_i32_0 = arith.constant 0 : i32
    %c0_i32_1 = arith.constant 0 : i32
    return %c0_i32, %c0_i32_0 : i32, i32
  }
  func.func @transform_2(%arg0: i32, %arg1: i32) -> (i32, i32) {
    %c0_i32 = arith.constant 0 : i32
    %c0_i32_0 = arith.constant 0 : i32
    %c0_i32_1 = arith.constant 0 : i32
    return %c0_i32, %c0_i32_0 : i32, i32
  }
  func.func @transform_3(%arg0: i32, %arg1: i32) -> (i32, i32) {
    %c0_i32 = arith.constant 0 : i32
    %c0_i32_0 = arith.constant 0 : i32
    %c0_i32_1 = arith.constant 0 : i32
    return %c0_i32, %c0_i32_0 : i32, i32
  }
  func.func @transform_4(%arg0: i32, %arg1: i32) -> (i32, i32) {
    %c0_i32 = arith.constant 0 : i32
    %c0_i32_0 = arith.constant 0 : i32
    %c0_i32_1 = arith.constant 0 : i32
    return %c0_i32, %c0_i32_0 : i32, i32
  }
  func.func @transform_5(%arg0: i32, %arg1: i32) -> (i32, i32) {
    %c0_i32 = arith.constant 0 : i32
    %c0_i32_0 = arith.constant 0 : i32
    %c0_i32_1 = arith.constant 0 : i32
    return %c0_i32, %c0_i32_0 : i32, i32
  }
  func.func @transform_6(%arg0: i32, %arg1: i32) -> (i32, i32, i32) {
    %c0_i32 = arith.constant 0 : i32
    %c0_i32_0 = arith.constant 0 : i32
    return %arg1, %arg0, %c0_i32 : i32, i32, i32
  }
}

</mosaic_0001>

<bundles_post_ra>
// kernel: tpu_custom_call.1
= control target key start
LH: loop header
LB: loop body
LE: loop exit
PB: predicated region body
PF: predicated region fallthrough
CT: control target
= control target key end

     0   :  { %11 = vsyncpa [#allocation7], 0  ;;  %s1321_s0 = inlined_call_operand.hbm [shape: bf16[8,8,32], index: 0, kind: input, shape index: {}]   ;;  %s1322_s1 = inlined_call_operand.hbm [shape: bf16[32,128], index: 1, kind: input, shape index: {}]   ;;  %s1323_s2 = inlined_call_operand.hbm [shape: bf16[32,128], index: 2, kind: input, shape index: {}]   ;;  %s1324_s3 = inlined_call_operand.vmem [shape: f32[1,128], index: 3, kind: input, shape index: {}]   ;;  %s1325_s4 = inlined_call_operand.hbm [shape: bf16[32,128], index: 4, kind: input, shape index: {}]   ;;  %s1326_s5 = inlined_call_operand.vmem [shape: f32[1,128], index: 5, kind: input, shape index: {}]   ;;  %s1327_s6 = inlined_call_operand.hbm [shape: f32[8,8,128], index: 6, kind: output, shape index: {}]  }
   0x1   :  { %12 = vsyncpa [#allocation10], 0 }
   0x2   :  { %13 = vsyncpa [#allocation13], 0 }
   0x3   :  { %14 = vsyncpa [#allocation8], 0  ;;  %s32_s23 = sshll.u32 %s1322_s1, 4  ;;  %s1118_s24 = smov [#allocation9]   ;;  %s33_s23 = int_to_ptr.hbm [resolvable:$true] %s32_s23 }
   0x4   :  { %s34_s25 = sshll.u32 %s1118_s24, 4  ;;  %s19_s28 = sshll.u32 %s1321_s0, 4  ;;  %s35_s25 = int_to_ptr.vmem [resolvable:$true] %s34_s25  ;;  %s20_s28 = int_to_ptr.hbm [resolvable:$true] %s19_s28 }
   0x5   :  { %s1119_s29 = smov 64   ;;  %s1120_s30 = smov 4  }
   0x6   :  { %40 = dma.hbm_to_vmem [thread:$0]  %s33_s23, 256, %s35_s25, [#allocation10], %s1119_s29, %s1119_s29, %s1120_s30  }
   0x7   :  { %s1121_s7 = smov [#allocation6]   ;;  %s45_s1 = sshll.u32 %s1323_s2, 4  ;;  %s46_s1 = int_to_ptr.hbm [resolvable:$true] %s45_s1 }
   0x8   :  { %s21_s8 = sshll.u32 %s1121_s7, 4  ;;  %s60_s0 = sshll.u32 %s1325_s4, 4  ;;  %s22_s8 = int_to_ptr.vmem [resolvable:$true] %s21_s8  ;;  %s61_s0 = int_to_ptr.hbm [resolvable:$true] %s60_s0 }
   0x9   :  { %27 = dma.hbm_to_vmem [thread:$0]  %s20_s28, 512, %s22_s8, [#allocation7], %s1119_s29, %s1119_s29, %s1120_s30  }
   0xa   :  { %s1122_s13 = smov [#allocation11]   ;;  %s1123_s15 = smov [#allocation12]  }
   0xb   :  { %s47_s14 = sshll.u32 %s1122_s13, 4  ;;  %s62_s16 = sshll.u32 %s1123_s15, 4  ;;  %s48_s14 = int_to_ptr.vmem [resolvable:$true] %s47_s14  ;;  %s63_s16 = int_to_ptr.vmem [resolvable:$true] %s62_s16 }
   0xc   :  { %53 = dma.hbm_to_vmem [thread:$0]  %s46_s1, 256, %s48_s14, [#allocation10], %s1119_s29, %s1119_s29, %s1120_s30  }
   0xd   :  { %68 = dma.hbm_to_vmem [thread:$0]  %s61_s0, 256, %s63_s16, [#allocation13], %s1119_s29, %s1119_s29, %s1120_s30  }
   0xe   :  { %1110 = dma.done.wait [#allocation7], 512  }
   0xf   :  { %1111 = vsyncadd [#allocation7], 4294966784 }
  0x10   :  { %1112 = dma.done.wait [#allocation10], 512  }
  0x11   :  { %1113 = vsyncadd [#allocation10], 4294966784 }
  0x12   :  { %1114 = dma.done.wait [#allocation13], 256  }
  0x13   :  { %1115 = vsyncadd [#allocation13], 4294967040  ;;  %vm92_vm0 = vcmask 261120   ;;  %v1124_v0 = vmov 0.0   ;;  %v907_v1 = vld [vmem:[#allocation9 + $0x8] sm:$0xff]  ;;  %v1187_v2 = vld [vmem:[#allocation11 + $0x8] sm:$0xff] }
  0x14   :  { %93 = vst.msk [vmem:[#allocation4] sm:$0xff] %vm92_vm0, %v1124_v0  ;;  %v906_v3 = vld [vmem:[#allocation9] sm:$0xff]  ;;  %v1189_v4 = vld [vmem:[#allocation11] sm:$0xff]  ;;  %162 = vmatpush.bf16.msra.mxu0 %v907_v1  ;;  %222 = vmatpush.bf16.msra.mxu1 %v1187_v2  ;;  %s1125_s17 = smov 32   ;;  %s831_s23 = sshll.u32 %s1327_s6, 4  ;;  %s832_s23 = int_to_ptr.hbm [resolvable:$true] %s831_s23 }
  0x15   :  { %94 = vst.msk [vmem:[#allocation5] sm:$0xff] %vm92_vm0, %v1124_v0  ;;  %291 = vmatpush.bf16.msra.mxu2 %v1187_v2  ;;  %v902_v6 = vld [vmem:[#allocation6] sm:$0xff]  ;;  %v1206_v8 = vld [vmem:[%s1324_s3] ss:$0 sm:$0xff]  ;;  %s1126_s3 = smov 96   ;;  %s1128_s24 = smov 128  }
  0x16   :  { %s1129_s25 = smov 8  }
  0x18   :  { %163 = vmatpush.bf16.msra.mxu0 %v906_v3  ;;  %223 = vmatpush.bf16.msra.mxu1 %v1189_v4 }
  0x19   :  { %292 = vmatpush.bf16.msra.mxu2 %v1189_v4 }
  0x1b   :  { %v197_v5 = vld [vmem:[#allocation4] sm:$0xff]  ;;  %870 = vmatmul.msk.bf16.vlgmr.msra.gmra.mxu0 %vm92_vm0, %v902_v6 }
  0x1c   :  { %v200_v7 = vpack.c.bf16 %v197_v5, %v197_v5  ;;  %357 = vmatpush.bf16.msrb.mxu1 %v1187_v2  ;;  %v198_v15 = vld [vmem:[#allocation5] sm:$0xff]  ;;  %v903_v5 = vld [vmem:[#allocation6 + $0x8] sm:$0xff] }
  0x1d   :  { %489 = vmatpush.bf16.msrb.mxu2 %v1187_v2 }
  0x1e   :  { %882 = vmatmul.msk.bf16.vlgmr.msra.gmra.mxu1 %vm92_vm0, %v200_v7 }
  0x20   :  { %358 = vmatpush.bf16.msrb.mxu1 %v1189_v4 }
  0x21   :  { %490 = vmatpush.bf16.msrb.mxu2 %v1189_v4 }
  0x24   :  { %423 = vmatpush.bf16.msra.mxu1 %v1187_v2 }
  0x28   :  { %424 = vmatpush.bf16.msra.mxu1 %v1189_v4 }
  0x2b   :  { %871 = vmatmul.msk.bf16.gmra.mxu0 %vm92_vm0, %v903_v5 }
  0x98   :  { %v165_v9 = vpop.f32.mrf.mxu0 }
  0x99   :  { %v166_v11 = vadd.f32 %v1206_v8, %v165_v9 }
  0x9b   :  { %v225_v10 = vpop.f32.mrf.mxu1 }
  0x9c   :  { %v229_v12 = vadd.f32 %v225_v10, %v166_v11 }
  0x9e   :  { %926 = vtanh.f32 %v229_v12  ;;  %v230_v16 = vsub.f32 0.0, %v229_v12 }
  0xa0   :  { %v231_v17 = vmul.f32 1.442695, %v230_v16  ;;  %v167_v41 = vpop.f32.mrf.mxu0 }
  0xa1   :  { %v168_v42 = vadd.f32 %v1206_v8, %v167_v41 }
  0xa2   :  { %928 = vpow2.f32 %v231_v17 }
  0xa3   :  { %v227_v13 = vpop.f32.mrf.mxu1 }
  0xa4   :  { %v927_v14 = vpop.eup %926 }
  0xa5   :  { %256 = vrot.lane.b32.xlu0 %v927_v14, %s1119_s29 }
  0xa8   :  { %v929_v18 = vpop.eup %928  ;;  %v170_v11 = vpop.f32.mrf.mxu0 }
  0xa9   :  { %v233_v19 = vadd.f32 1.0, %v929_v18  ;;  %v171_v12 = vadd.f32 %v1206_v8, %v170_v11 }
  0xab   :  { %930 = vrcp.f32 %v233_v19  ;;  %v245_v25 = vand.u32 2147483648, %v233_v19  ;;  %vm239_vm2 = vweird.f32 %v233_v19  ;;  %v243_v26 = vand.u32 2147483647, %v233_v19 }
  0xad   :  { %251 = vrot.lane.b32.xlu0 %v198_v15, %s1125_s17  ;;  %v246_v28 = vor.u32 1.1754944e-38, %v245_v25  ;;  %vm244_vm4 = vcmp.eq.f32.partialorder %v243_v26, 8.507059e+37 }
  0xb1   :  { %v931_v20 = vpop.eup %930 }
  0xb2   :  { %v235_v21 = vmul.f32 %v931_v20, %v233_v19  ;;  %vm240_vm1 = vweird.f32 %v931_v20 }
  0xb3   :  { %vm241_vm3 = vmor %vm239_vm2, %vm240_vm1 }
  0xb4   :  { %v236_v22 = vsub.f32 1.0, %v235_v21 }
  0xb6   :  { %v237_v23 = vmul.f32 %v931_v20, %v236_v22 }
  0xb8   :  { %v238_v24 = vadd.f32 %v931_v20, %v237_v23 }
  0xba   :  { %v242_v27 = vsel %vm241_vm3, %v931_v20, %v238_v24 }
  0xbb   :  { %v247_v30 = vsel %vm244_vm4, %v246_v28, %v242_v27 }
 0x117   :  { %v257_v29 = vpop.permute.xlu0 %256 }
 0x118   :  { %v259_v31 = vmul.f32 %v257_v29, %v247_v30 }
 0x11a   :  { %261 = vrot.lane.b32.xlu1 %v259_v31, %s1125_s17 }
 0x11f   :  { %v252_v32 = vpop.permute.xlu0 %251 }
 0x120   :  { %v254_v33 = vmul.f32 %v252_v32, %v247_v30 }
 0x18c   :  { %v262_v34 = vpop.permute.xlu1 %261 }
 0x18d   :  { %v264_v35 = vadd.f32 %v262_v34, %v254_v33 }
 0x18f   :  { %932 = vtanh.f32 %v264_v35 }
 0x195   :  { %v933_v36 = vpop.eup %932 }
 0x196   :  { %267 = vrot.lane.b32.xlu1 %v933_v36, %s1119_s29 }
 0x208   :  { %v268_v37 = vpop.permute.xlu1 %267 }
 0x209   :  { %v1213_v38 = vmul.f32 %v268_v37, %v247_v30 }
 0x20b   :  { %v278_v39 = vpack.c.bf16 %v1213_v38, %v1213_v38 }
 0x20d   :  { %280 = vrot.lane.b32.xlu2 %v278_v39, %s1125_s17 }
 0x267   :  { %v281_v40 = vpop.permute.xlu2 %280 }
 0x268   :  { %883 = vmatmul.msk.bf16.vlgmr.msra.gmra.mxu2 %vm92_vm0, %v281_v40 }
 0x269   :  { %555 = vmatpush.bf16.msra.mxu2 %v1187_v2 }
 0x26d   :  { %556 = vmatpush.bf16.msra.mxu2 %v1189_v4 }
 0x2eb   :  { %v294_v43 = vpop.f32.mrf.mxu2 }
 0x2ec   :  { %v298_v44 = vadd.f32 %v294_v43, %v168_v42  ;;  %v172_v42 = vpop.f32.mrf.mxu0 }
 0x2ed   :  { %v173_v43 = vadd.f32 %v1206_v8, %v172_v42 }
 0x2ee   :  { %934 = vtanh.f32 %v298_v44  ;;  %v299_v47 = vsub.f32 0.0, %v298_v44 }
 0x2f0   :  { %v300_v48 = vmul.f32 1.442695, %v299_v47 }
 0x2f2   :  { %936 = vpow2.f32 %v300_v48 }
 0x2f3   :  { %v296_v45 = vpop.f32.mrf.mxu2 }
 0x2f4   :  { %v935_v46 = vpop.eup %934 }
 0x2f5   :  { %321 = vrot.lane.b32.xlu2 %v935_v46, %s1119_s29 }
 0x2f8   :  { %v937_v49 = vpop.eup %936 }
 0x2f9   :  { %v302_v50 = vadd.f32 1.0, %v937_v49 }
 0x2fb   :  { %938 = vrcp.f32 %v302_v50  ;;  %v314_v56 = vand.u32 2147483648, %v302_v50  ;;  %vm308_vm6 = vweird.f32 %v302_v50  ;;  %v312_v57 = vand.u32 2147483647, %v302_v50 }
 0x2fd   :  { %v315_v59 = vor.u32 1.1754944e-38, %v314_v56  ;;  %vm313_vm8 = vcmp.eq.f32.partialorder %v312_v57, 8.507059e+37 }
 0x301   :  { %v939_v51 = vpop.eup %938 }
 0x302   :  { %v304_v52 = vmul.f32 %v939_v51, %v302_v50  ;;  %vm309_vm5 = vweird.f32 %v939_v51 }
 0x303   :  { %vm310_vm7 = vmor %vm308_vm6, %vm309_vm5 }
 0x304   :  { %v305_v53 = vsub.f32 1.0, %v304_v52 }
 0x306   :  { %v306_v54 = vmul.f32 %v939_v51, %v305_v53 }
 0x308   :  { %v307_v55 = vadd.f32 %v939_v51, %v306_v54 }
 0x30a   :  { %v311_v58 = vsel %vm310_vm7, %v939_v51, %v307_v55 }
 0x30b   :  { %v316_v61 = vsel %vm313_vm8, %v315_v59, %v311_v58 }
 0x30c   :  { %v319_v63 = vmul.f32 %v316_v61, %v264_v35 }
 0x34f   :  { %v322_v60 = vpop.permute.xlu2 %321 }
 0x350   :  { %v324_v62 = vmul.f32 %v322_v60, %v316_v61 }
 0x352   :  { %326 = vrot.lane.b32.xlu0 %v324_v62, %s1125_s17 }
 0x3c4   :  { %v327_v0 = vpop.permute.xlu0 %326 }
 0x3c5   :  { %v329_v1 = vadd.f32 %v327_v0, %v319_v63 }
 0x3c7   :  { %940 = vtanh.f32 %v329_v1 }
 0x3cd   :  { %v941_v3 = vpop.eup %940 }
 0x3ce   :  { %332 = vrot.lane.b32.xlu1 %v941_v3, %s1119_s29 }
 0x440   :  { %v333_v6 = vpop.permute.xlu1 %332 }
 0x441   :  { %v1226_v7 = vmul.f32 %v333_v6, %v316_v61  ;;  %v904_v6 = vld [vmem:[#allocation6 + $0x10] sm:$0xff] }
 0x442   :  { %872 = vmatmul.msk.bf16.gmra.mxu0 %vm92_vm0, %v904_v6 }
 0x443   :  { %v344_v9 = vpack.c.bf16 %v1226_v7, %v1226_v7 }
 0x445   :  { %346 = vrot.lane.b32.xlu2 %v344_v9, %s1125_s17 }
 0x49f   :  { %v347_v10 = vpop.permute.xlu2 %346 }
 0x4a0   :  { %884 = vmatmul.msk.bf16.vlgmr.msrb.gmra.mxu1 %vm92_vm0, %v347_v10 }
 0x4a1   :  { %621 = vmatpush.bf16.msrb.mxu1 %v1187_v2 }
 0x4a5   :  { %622 = vmatpush.bf16.msrb.mxu1 %v1189_v4 }
 0x51d   :  { %v360_v13 = vpop.f32.mrf.mxu1 }
 0x51e   :  { %v364_v14 = vadd.f32 %v360_v13, %v171_v12  ;;  %v175_v13 = vpop.f32.mrf.mxu0 }
 0x520   :  { %942 = vtanh.f32 %v364_v14  ;;  %v365_v17 = vsub.f32 0.0, %v364_v14  ;;  %v176_v14 = vadd.f32 %v1206_v8, %v175_v13 }
 0x522   :  { %v366_v18 = vmul.f32 1.442695, %v365_v17 }
 0x524   :  { %944 = vpow2.f32 %v366_v18 }
 0x525   :  { %v362_v15 = vpop.f32.mrf.mxu1 }
 0x526   :  { %v943_v16 = vpop.eup %942 }
 0x527   :  { %387 = vrot.lane.b32.xlu0 %v943_v16, %s1119_s29 }
 0x52a   :  { %v945_v19 = vpop.eup %944 }
 0x52b   :  { %v368_v20 = vadd.f32 1.0, %v945_v19 }
 0x52d   :  { %946 = vrcp.f32 %v368_v20  ;;  %v380_v26 = vand.u32 2147483648, %v368_v20  ;;  %vm374_vm10 = vweird.f32 %v368_v20  ;;  %v378_v27 = vand.u32 2147483647, %v368_v20 }
 0x52f   :  { %v381_v29 = vor.u32 1.1754944e-38, %v380_v26  ;;  %vm379_vm12 = vcmp.eq.f32.partialorder %v378_v27, 8.507059e+37 }
 0x533   :  { %v947_v21 = vpop.eup %946 }
 0x534   :  { %v370_v22 = vmul.f32 %v947_v21, %v368_v20  ;;  %vm375_vm9 = vweird.f32 %v947_v21 }
 0x535   :  { %vm376_vm11 = vmor %vm374_vm10, %vm375_vm9 }
 0x536   :  { %v371_v23 = vsub.f32 1.0, %v370_v22 }
 0x538   :  { %v372_v24 = vmul.f32 %v947_v21, %v371_v23 }
 0x53a   :  { %v373_v25 = vadd.f32 %v947_v21, %v372_v24 }
 0x53c   :  { %v377_v28 = vsel %vm376_vm11, %v947_v21, %v373_v25 }
 0x53d   :  { %v382_v31 = vsel %vm379_vm12, %v381_v29, %v377_v28 }
 0x53e   :  { %v385_v33 = vmul.f32 %v382_v31, %v329_v1 }
 0x599   :  { %v388_v30 = vpop.permute.xlu0 %387 }
 0x59a   :  { %v390_v32 = vmul.f32 %v388_v30, %v382_v31 }
 0x59c   :  { %392 = vrot.lane.b32.xlu1 %v390_v32, %s1125_s17 }
 0x60e   :  { %v393_v34 = vpop.permute.xlu1 %392 }
 0x60f   :  { %v395_v35 = vadd.f32 %v393_v34, %v385_v33 }
 0x611   :  { %948 = vtanh.f32 %v395_v35 }
 0x617   :  { %v949_v36 = vpop.eup %948 }
 0x618   :  { %398 = vrot.lane.b32.xlu2 %v949_v36, %s1119_s29 }
 0x672   :  { %v399_v37 = vpop.permute.xlu2 %398 }
 0x673   :  { %v1238_v39 = vmul.f32 %v399_v37, %v382_v31 }
 0x675   :  { %v410_v40 = vpack.c.bf16 %v1238_v39, %v1238_v39 }
 0x677   :  { %412 = vrot.lane.b32.xlu0 %v410_v40, %s1125_s17 }
 0x6e9   :  { %v413_v41 = vpop.permute.xlu0 %412 }
 0x6ea   :  { %885 = vmatmul.msk.bf16.vlgmr.msra.gmra.mxu1 %vm92_vm0, %v413_v41 }
 0x767   :  { %v426_v44 = vpop.f32.mrf.mxu1 }
 0x768   :  { %v430_v45 = vadd.f32 %v426_v44, %v173_v43  ;;  %v177_v43 = vpop.f32.mrf.mxu0 }
 0x769   :  { %v178_v44 = vadd.f32 %v1206_v8, %v177_v43 }
 0x76a   :  { %950 = vtanh.f32 %v430_v45  ;;  %v431_v48 = vsub.f32 0.0, %v430_v45 }
 0x76c   :  { %v432_v49 = vmul.f32 1.442695, %v431_v48 }
 0x76e   :  { %952 = vpow2.f32 %v432_v49 }
 0x76f   :  { %v428_v46 = vpop.f32.mrf.mxu1 }
 0x770   :  { %v951_v47 = vpop.eup %950 }
 0x771   :  { %453 = vrot.lane.b32.xlu1 %v951_v47, %s1119_s29 }
 0x774   :  { %v953_v50 = vpop.eup %952 }
 0x775   :  { %v434_v51 = vadd.f32 1.0, %v953_v50 }
 0x777   :  { %954 = vrcp.f32 %v434_v51  ;;  %v446_v57 = vand.u32 2147483648, %v434_v51  ;;  %vm440_vm14 = vweird.f32 %v434_v51  ;;  %v444_v58 = vand.u32 2147483647, %v434_v51 }
 0x779   :  { %v447_v60 = vor.u32 1.1754944e-38, %v446_v57  ;;  %vm445_vm1 = vcmp.eq.f32.partialorder %v444_v58, 8.507059e+37 }
 0x77d   :  { %v955_v52 = vpop.eup %954 }
 0x77e   :  { %v436_v53 = vmul.f32 %v955_v52, %v434_v51  ;;  %vm441_vm13 = vweird.f32 %v955_v52 }
 0x77f   :  { %vm442_vm15 = vmor %vm440_vm14, %vm441_vm13 }
 0x780   :  { %v437_v54 = vsub.f32 1.0, %v436_v53 }
 0x782   :  { %v438_v55 = vmul.f32 %v955_v52, %v437_v54 }
 0x784   :  { %v439_v56 = vadd.f32 %v955_v52, %v438_v55 }
 0x786   :  { %v443_v59 = vsel %vm442_vm15, %v955_v52, %v439_v56 }
 0x787   :  { %v448_v62 = vsel %vm445_vm1, %v447_v60, %v443_v59 }
 0x788   :  { %v451_v0 = vmul.f32 %v448_v62, %v395_v35 }
 0x7e3   :  { %v454_v61 = vpop.permute.xlu1 %453 }
 0x7e4   :  { %v456_v63 = vmul.f32 %v454_v61, %v448_v62 }
 0x7e6   :  { %458 = vrot.lane.b32.xlu2 %v456_v63, %s1125_s17 }
 0x840   :  { %v459_v1 = vpop.permute.xlu2 %458 }
 0x841   :  { %v461_v3 = vadd.f32 %v459_v1, %v451_v0 }
 0x843   :  { %956 = vtanh.f32 %v461_v3 }
 0x849   :  { %v957_v5 = vpop.eup %956 }
 0x84a   :  { %464 = vrot.lane.b32.xlu0 %v957_v5, %s1119_s29 }
 0x8bc   :  { %v465_v9 = vpop.permute.xlu0 %464 }
 0x8bd   :  { %v1249_v10 = vmul.f32 %v465_v9, %v448_v62  ;;  %v905_v9 = vld [vmem:[#allocation6 + $0x18] sm:$0xff] }
 0x8be   :  { %873 = vmatmul.msk.bf16.gmra.mxu0 %vm92_vm0, %v905_v9 }
 0x8bf   :  { %v476_v11 = vpack.c.bf16 %v1249_v10, %v1249_v10 }
 0x8c1   :  { %478 = vrot.lane.b32.xlu1 %v476_v11, %s1125_s17 }
 0x933   :  { %v479_v12 = vpop.permute.xlu1 %478 }
 0x934   :  { %886 = vmatmul.msk.bf16.vlgmr.msrb.gmra.mxu2 %vm92_vm0, %v479_v12 }
 0x935   :  { %687 = vmatpush.bf16.msrb.mxu2 %v1187_v2 }
 0x939   :  { %688 = vmatpush.bf16.msrb.mxu2 %v1189_v4 }
 0x9b7   :  { %v492_v15 = vpop.f32.mrf.mxu2 }
 0x9b8   :  { %v496_v16 = vadd.f32 %v492_v15, %v176_v14  ;;  %v180_v15 = vpop.f32.mrf.mxu0 }
 0x9ba   :  { %958 = vtanh.f32 %v496_v16  ;;  %v497_v19 = vsub.f32 0.0, %v496_v16  ;;  %v181_v16 = vadd.f32 %v1206_v8, %v180_v15 }
 0x9bc   :  { %v498_v20 = vmul.f32 1.442695, %v497_v19 }
 0x9be   :  { %960 = vpow2.f32 %v498_v20 }
 0x9bf   :  { %v494_v17 = vpop.f32.mrf.mxu2 }
 0x9c0   :  { %v959_v18 = vpop.eup %958 }
 0x9c1   :  { %519 = vrot.lane.b32.xlu2 %v959_v18, %s1119_s29 }
 0x9c4   :  { %v961_v21 = vpop.eup %960 }
 0x9c5   :  { %v500_v22 = vadd.f32 1.0, %v961_v21 }
 0x9c7   :  { %962 = vrcp.f32 %v500_v22  ;;  %v512_v26 = vand.u32 2147483648, %v500_v22  ;;  %vm506_vm3 = vweird.f32 %v500_v22  ;;  %v510_v27 = vand.u32 2147483647, %v500_v22 }
 0x9c9   :  { %v513_v29 = vor.u32 1.1754944e-38, %v512_v26  ;;  %vm511_vm5 = vcmp.eq.f32.partialorder %v510_v27, 8.507059e+37 }
 0x9cd   :  { %v963_v23 = vpop.eup %962 }
 0x9ce   :  { %v502_v2 = vmul.f32 %v963_v23, %v500_v22  ;;  %vm507_vm2 = vweird.f32 %v963_v23 }
 0x9cf   :  { %vm508_vm4 = vmor %vm506_vm3, %vm507_vm2 }
 0x9d0   :  { %v503_v24 = vsub.f32 1.0, %v502_v2 }
 0x9d2   :  { %v504_v4 = vmul.f32 %v963_v23, %v503_v24 }
 0x9d4   :  { %v505_v25 = vadd.f32 %v963_v23, %v504_v4 }
 0x9d6   :  { %v509_v28 = vsel %vm508_vm4, %v963_v23, %v505_v25 }
 0x9d7   :  { %v514_v31 = vsel %vm511_vm5, %v513_v29, %v509_v28 }
 0x9d8   :  { %v517_v33 = vmul.f32 %v514_v31, %v461_v3 }
 0xa1b   :  { %v520_v30 = vpop.permute.xlu2 %519 }
 0xa1c   :  { %v522_v32 = vmul.f32 %v520_v30, %v514_v31 }
 0xa1e   :  { %524 = vrot.lane.b32.xlu0 %v522_v32, %s1125_s17 }
 0xa90   :  { %v525_v34 = vpop.permute.xlu0 %524 }
 0xa91   :  { %v527_v35 = vadd.f32 %v525_v34, %v517_v33 }
 0xa93   :  { %964 = vtanh.f32 %v527_v35 }
 0xa99   :  { %v965_v36 = vpop.eup %964 }
 0xa9a   :  { %530 = vrot.lane.b32.xlu1 %v965_v36, %s1119_s29 }
 0xb0c   :  { %v531_v37 = vpop.permute.xlu1 %530 }
 0xb0d   :  { %v1261_v40 = vmul.f32 %v531_v37, %v514_v31 }
 0xb0f   :  { %v542_v41 = vpack.c.bf16 %v1261_v40, %v1261_v40 }
 0xb11   :  { %544 = vrot.lane.b32.xlu2 %v542_v41, %s1125_s17 }
 0xb6b   :  { %v545_v42 = vpop.permute.xlu2 %544 }
 0xb6c   :  { %887 = vmatmul.msk.bf16.vlgmr.msra.gmra.mxu2 %vm92_vm0, %v545_v42 }
 0xbef   :  { %v558_v45 = vpop.f32.mrf.mxu2 }
 0xbf0   :  { %v562_v46 = vadd.f32 %v558_v45, %v178_v44 }
 0xbf2   :  { %966 = vtanh.f32 %v562_v46  ;;  %v563_v49 = vsub.f32 0.0, %v562_v46 }
 0xbf4   :  { %v564_v50 = vmul.f32 1.442695, %v563_v49  ;;  %v182_v49 = vpop.f32.mrf.mxu0 }
 0xbf6   :  { %968 = vpow2.f32 %v564_v50 }
 0xbf7   :  { %v560_v47 = vpop.f32.mrf.mxu2 }
 0xbf8   :  { %v967_v48 = vpop.eup %966 }
 0xbf9   :  { %585 = vrot.lane.b32.xlu0 %v967_v48, %s1119_s29 }
 0xbfc   :  { %v969_v51 = vpop.eup %968 }
 0xbfd   :  { %v566_v52 = vadd.f32 1.0, %v969_v51 }
 0xbff   :  { %970 = vrcp.f32 %v566_v52  ;;  %v578_v58 = vand.u32 2147483648, %v566_v52  ;;  %vm572_vm7 = vweird.f32 %v566_v52  ;;  %v576_v59 = vand.u32 2147483647, %v566_v52 }
 0xc01   :  { %v579_v61 = vor.u32 1.1754944e-38, %v578_v58  ;;  %vm577_vm9 = vcmp.eq.f32.partialorder %v576_v59, 8.507059e+37  ;;  %v910_v58 = vld [vmem:[#allocation12] sm:$0xff] }
 0xc05   :  { %v971_v53 = vpop.eup %970 }
 0xc06   :  { %v568_v54 = vmul.f32 %v971_v53, %v566_v52  ;;  %vm573_vm6 = vweird.f32 %v971_v53 }
 0xc07   :  { %vm574_vm8 = vmor %vm572_vm7, %vm573_vm6 }
 0xc08   :  { %v569_v55 = vsub.f32 1.0, %v568_v54 }
 0xc0a   :  { %v570_v56 = vmul.f32 %v971_v53, %v569_v55 }
 0xc0c   :  { %v571_v57 = vadd.f32 %v971_v53, %v570_v56  ;;  %v911_v56 = vld [vmem:[#allocation12 + $0x8] sm:$0xff] }
 0xc0d   :  { %794 = vmatpush.bf16.msra.mxu3 %v911_v56 }
 0xc0e   :  { %v575_v60 = vsel %vm574_vm8, %v971_v53, %v571_v57 }
 0xc0f   :  { %v580_v63 = vsel %vm577_vm9, %v579_v61, %v575_v60 }
 0xc10   :  { %v583_v1 = vmul.f32 %v580_v63, %v527_v35 }
 0xc11   :  { %795 = vmatpush.bf16.msra.mxu3 %v910_v58 }
 0xc6b   :  { %v586_v62 = vpop.permute.xlu0 %585 }
 0xc6c   :  { %v588_v0 = vmul.f32 %v586_v62, %v580_v63 }
 0xc6e   :  { %590 = vrot.lane.b32.xlu1 %v588_v0, %s1125_s17 }
 0xce0   :  { %v591_v3 = vpop.permute.xlu1 %590 }
 0xce1   :  { %v593_v5 = vadd.f32 %v591_v3, %v583_v1 }
 0xce3   :  { %972 = vtanh.f32 %v593_v5 }
 0xce9   :  { %v973_v6 = vpop.eup %972 }
 0xcea   :  { %596 = vrot.lane.b32.xlu2 %v973_v6, %s1119_s29 }
 0xd44   :  { %v597_v11 = vpop.permute.xlu2 %596 }
 0xd45   :  { %v599_v12 = vmul.f32 %v597_v11, %v580_v63 }
 0xd47   :  { %v608_v13 = vpack.c.bf16 %v599_v12, %v599_v12 }
 0xd49   :  { %610 = vrot.lane.b32.xlu0 %v608_v13, %s1125_s17 }
 0xdbb   :  { %v611_v14 = vpop.permute.xlu0 %610 }
 0xdbc   :  { %888 = vmatmul.msk.bf16.vlgmr.msrb.gmra.mxu1 %vm92_vm0, %v611_v14 }
 0xe39   :  { %v624_v17 = vpop.f32.mrf.mxu1 }
 0xe3a   :  { %v628_v18 = vadd.f32 %v624_v17, %v181_v16 }
 0xe3c   :  { %974 = vtanh.f32 %v628_v18  ;;  %v629_v21 = vsub.f32 0.0, %v628_v18 }
 0xe3e   :  { %v630_v22 = vmul.f32 1.442695, %v629_v21 }
 0xe40   :  { %976 = vpow2.f32 %v630_v22  ;;  %v925_v22 = vld [vmem:[%s1326_s5] ss:$0 sm:$0xff]  ;;  %s1127_s5 = smov [#allocation14]  }
 0xe41   :  { %v626_v19 = vpop.f32.mrf.mxu1  ;;  %s829_s20 = sshll.u32 %s1127_s5, 4  ;;  %s830_s20 = int_to_ptr.vmem [resolvable:$true] %s829_s20 }
 0xe42   :  { %v975_v20 = vpop.eup %974 }
 0xe43   :  { %651 = vrot.lane.b32.xlu1 %v975_v20, %s1119_s29 }
 0xe46   :  { %v977_v23 = vpop.eup %976 }
 0xe47   :  { %v632_v2 = vadd.f32 1.0, %v977_v23 }
 0xe49   :  { %978 = vrcp.f32 %v632_v2  ;;  %v644_v28 = vand.u32 2147483648, %v632_v2  ;;  %vm638_vm11 = vweird.f32 %v632_v2  ;;  %v642_v29 = vand.u32 2147483647, %v632_v2 }
 0xe4b   :  { %v645_v31 = vor.u32 1.1754944e-38, %v644_v28  ;;  %vm643_vm13 = vcmp.eq.f32.partialorder %v642_v29, 8.507059e+37 }
 0xe4f   :  { %v979_v24 = vpop.eup %978 }
 0xe50   :  { %v634_v4 = vmul.f32 %v979_v24, %v632_v2  ;;  %vm639_vm10 = vweird.f32 %v979_v24 }
 0xe51   :  { %vm640_vm12 = vmor %vm638_vm11, %vm639_vm10 }
 0xe52   :  { %v635_v25 = vsub.f32 1.0, %v634_v4 }
 0xe54   :  { %v636_v26 = vmul.f32 %v979_v24, %v635_v25 }
 0xe56   :  { %v637_v27 = vadd.f32 %v979_v24, %v636_v26 }
 0xe58   :  { %v641_v30 = vsel %vm640_vm12, %v979_v24, %v637_v27 }
 0xe59   :  { %v646_v33 = vsel %vm643_vm13, %v645_v31, %v641_v30 }
 0xe5a   :  { %v649_v35 = vmul.f32 %v646_v33, %v593_v5 }
 0xeb5   :  { %v652_v32 = vpop.permute.xlu1 %651 }
 0xeb6   :  { %v654_v34 = vmul.f32 %v652_v32, %v646_v33 }
 0xeb8   :  { %656 = vrot.lane.b32.xlu2 %v654_v34, %s1125_s17 }
 0xf12   :  { %v657_v36 = vpop.permute.xlu2 %656 }
 0xf13   :  { %v1277_v37 = vadd.f32 %v657_v36, %v649_v35 }
 0xf15   :  { %980 = vtanh.f32 %v1277_v37 }
 0xf1b   :  { %v981_v41 = vpop.eup %980 }
 0xf1c   :  { %662 = vrot.lane.b32.xlu0 %v981_v41, %s1119_s29 }
 0xf8e   :  { %v663_v42 = vpop.permute.xlu0 %662 }
 0xf8f   :  { %v665_v43 = vmul.f32 %v663_v42, %v646_v33 }
 0xf91   :  { %v674_v44 = vpack.c.bf16 %v665_v43, %v665_v43 }
 0xf93   :  { %676 = vrot.lane.b32.xlu1 %v674_v44, %s1125_s17 }
 0xf9b   :  { %272 = vrot.lane.b32.xlu1 %v1213_v38, %s1125_s17  ;;  %v183_v38 = vadd.f32 %v1206_v8, %v182_v49 }
 0xfa3   :  { %403 = vrot.lane.b32.xlu1 %v1238_v39, %s1125_s17 }
 0xfab   :  { %601 = vrot.lane.b32.xlu1 %v599_v12, %s1125_s17 }
0x1005   :  { %v677_v45 = vpop.permute.xlu1 %676 }
0x1006   :  { %889 = vmatmul.msk.bf16.vlgmr.msrb.gmra.mxu2 %vm92_vm0, %v677_v45 }
0x100d   :  { %v273_v46 = vpop.permute.xlu1 %272 }
0x100e   :  { %275 = vst.msk [vmem:[#allocation3] sm:$0xff] %vm92_vm0, %v273_v46 }
0x1015   :  { %v404_v47 = vpop.permute.xlu1 %403  ;;  %v744_v11 = vld [vmem:[#allocation3] sm:$0xff] }
0x1016   :  { %407 = vst.msk [vmem:[#allocation3 + $0x10] sm:$0xff] %vm92_vm0, %v404_v47 }
0x101d   :  { %v602_v48 = vpop.permute.xlu1 %601  ;;  %v746_v16 = vld [vmem:[#allocation3 + $0x10] sm:$0xff] }
0x101e   :  { %605 = vst.msk [vmem:[#allocation3 + $0x28] sm:$0xff] %vm92_vm0, %v602_v48 }
0x1025   :  { %v749_v33 = vld [vmem:[#allocation3 + $0x28] sm:$0xff] }
0x1089   :  { %v690_v50 = vpop.f32.mrf.mxu2 }
0x108a   :  { %v694_v51 = vadd.f32 %v690_v50, %v183_v38 }
0x108c   :  { %982 = vtanh.f32 %v694_v51  ;;  %v695_v53 = vsub.f32 0.0, %v694_v51 }
0x108e   :  { %v696_v54 = vmul.f32 1.442695, %v695_v53 }
0x1090   :  { %984 = vpow2.f32 %v696_v54 }
0x1091   :  { %v692_v39 = vpop.f32.mrf.mxu2 }
0x1092   :  { %v983_v52 = vpop.eup %982 }
0x1093   :  { %717 = vrot.lane.b32.xlu2 %v983_v52, %s1119_s29 }
0x1096   :  { %v985_v55 = vpop.eup %984 }
0x1097   :  { %v698_v8 = vadd.f32 1.0, %v985_v55 }
0x1099   :  { %986 = vrcp.f32 %v698_v8  ;;  %v710_v62 = vand.u32 2147483648, %v698_v8  ;;  %vm704_vm15 = vweird.f32 %v698_v8 }
0x109b   :  { %337 = vrot.lane.b32.xlu2 %v1226_v7, %s1125_s17  ;;  %v711_v0 = vor.u32 1.1754944e-38, %v710_v62 }
0x109f   :  { %v987_v57 = vpop.eup %986 }
0x10a0   :  { %v700_v59 = vmul.f32 %v987_v57, %v698_v8  ;;  %vm705_vm14 = vweird.f32 %v987_v57 }
0x10a1   :  { %vm706_vm1 = vmor %vm704_vm15, %vm705_vm14 }
0x10a2   :  { %v701_v60 = vsub.f32 1.0, %v700_v59 }
0x10a3   :  { %469 = vrot.lane.b32.xlu2 %v1249_v10, %s1125_s17  ;;  %v708_v10 = vand.u32 2147483647, %v698_v8 }
0x10a4   :  { %v702_v61 = vmul.f32 %v987_v57, %v701_v60 }
0x10a5   :  { %vm709_vm2 = vcmp.eq.f32.partialorder %v708_v10, 8.507059e+37 }
0x10a6   :  { %v703_v7 = vadd.f32 %v987_v57, %v702_v61 }
0x10a8   :  { %v707_v63 = vsel %vm706_vm1, %v987_v57, %v703_v7 }
0x10a9   :  { %v712_v3 = vsel %vm709_vm2, %v711_v0, %v707_v63 }
0x10aa   :  { %v715_v18 = vmul.f32 %v712_v3, %v1277_v37 }
0x10ab   :  { %667 = vrot.lane.b32.xlu2 %v665_v43, %s1125_s17 }
0x10ed   :  { %v718_v1 = vpop.permute.xlu2 %717 }
0x10ee   :  { %v720_v5 = vmul.f32 %v718_v1, %v712_v3 }
0x10f0   :  { %722 = vrot.lane.b32.xlu0 %v720_v5, %s1125_s17 }
0x10f5   :  { %v338_v6 = vpop.permute.xlu2 %337 }
0x10f6   :  { %341 = vst.msk [vmem:[#allocation3 + $0x8] sm:$0xff] %vm92_vm0, %v338_v6 }
0x10fd   :  { %v470_v9 = vpop.permute.xlu2 %469  ;;  %v745_v12 = vld [vmem:[#allocation3 + $0x8] sm:$0xff] }
0x10fe   :  { %473 = vst.msk [vmem:[#allocation3 + $0x18] sm:$0xff] %vm92_vm0, %v470_v9  ;;  %v752_v13 = vpack.c.bf16 %v745_v12, %v744_v11 }
0x1100   :  { %898 = vmatmul.msk.bf16.vlgmr.msra.gmra.mxu3 %vm92_vm0, %v752_v13 }
0x1105   :  { %v668_v14 = vpop.permute.xlu2 %667  ;;  %v747_v15 = vld [vmem:[#allocation3 + $0x18] sm:$0xff] }
0x1106   :  { %671 = vst.msk [vmem:[#allocation3 + $0x30] sm:$0xff] %vm92_vm0, %v668_v14  ;;  %v753_v17 = vpack.c.bf16 %v747_v15, %v746_v16 }
0x110d   :  { %v750_v36 = vld [vmem:[#allocation3 + $0x30] sm:$0xff] }
0x1110   :  { %899 = vmatmul.msk.bf16.gmra.mxu3 %vm92_vm0, %v753_v17 }
0x1162   :  { %v723_v19 = vpop.permute.xlu0 %722 }
0x1163   :  { %v725_v20 = vadd.f32 %v723_v19, %v715_v18 }
0x1165   :  { %988 = vtanh.f32 %v725_v20  ;;  %740 = vrot.lane.b32.xlu1 %v725_v20, %s1126_s3 }
0x116b   :  { %v989_v21 = vpop.eup %988 }
0x116c   :  { %728 = vrot.lane.b32.xlu0 %v989_v21, %s1119_s29 }
0x1174   :  { %535 = vrot.lane.b32.xlu0 %v1261_v40, %s1125_s17 }
0x1183   :  { %v797_v23 = vpop.f32.mrf.mxu3 }
0x1184   :  { %v798_v2 = vadd.f32 %v925_v22, %v797_v23 }
0x1186   :  { %817 = vst [vmem:[#allocation14] sm:$0xff] %v798_v2 }
0x118b   :  { %v799_v24 = vpop.f32.mrf.mxu3 }
0x118c   :  { %v800_v4 = vadd.f32 %v925_v22, %v799_v24 }
0x118e   :  { %818 = vst [vmem:[#allocation14 + $0x8] sm:$0xff] %v800_v4 }
0x1193   :  { %v802_v25 = vpop.f32.mrf.mxu3 }
0x1194   :  { %v803_v26 = vadd.f32 %v925_v22, %v802_v25 }
0x1196   :  { %819 = vst [vmem:[#allocation14 + $0x10] sm:$0xff] %v803_v26 }
0x119b   :  { %v804_v27 = vpop.f32.mrf.mxu3 }
0x119c   :  { %v805_v28 = vadd.f32 %v925_v22, %v804_v27 }
0x119e   :  { %820 = vst [vmem:[#allocation14 + $0x18] sm:$0xff] %v805_v28 }
0x11d7   :  { %v741_v29 = vpop.permute.xlu1 %740 }
0x11d8   :  { %743 = vst.msk [vmem:[#allocation5] sm:$0xff] %vm92_vm0, %v741_v29 }
0x11de   :  { %v729_v40 = vpop.permute.xlu0 %728 }
0x11df   :  { %v731_v30 = vmul.f32 %v729_v40, %v712_v3 }
0x11e1   :  { %733 = vrot.lane.b32.xlu0 %v731_v30, %s1125_s17 }
0x11e6   :  { %v536_v31 = vpop.permute.xlu0 %535 }
0x11e7   :  { %539 = vst.msk [vmem:[#allocation3 + $0x20] sm:$0xff] %vm92_vm0, %v536_v31 }
0x11ee   :  { %v748_v32 = vld [vmem:[#allocation3 + $0x20] sm:$0xff] }
0x11ef   :  { %v754_v34 = vpack.c.bf16 %v749_v33, %v748_v32 }
0x11f1   :  { %900 = vmatmul.msk.bf16.gmra.mxu3 %vm92_vm0, %v754_v34 }
0x1253   :  { %v734_v35 = vpop.permute.xlu0 %733 }
0x1254   :  { %737 = vst.msk [vmem:[#allocation3 + $0x38] sm:$0xff] %vm92_vm0, %v734_v35 }
0x1255   :  { %738 = vst.msk [vmem:[#allocation4] sm:$0xff] %vm92_vm0, %v734_v35 }
0x125b   :  { %v751_v37 = vld [vmem:[#allocation3 + $0x38] sm:$0xff] }
0x125c   :  { %v755_v41 = vpack.c.bf16 %v751_v37, %v750_v36 }
0x125e   :  { %901 = vmatmul.msk.bf16.gmra.mxu3 %vm92_vm0, %v755_v41 }
0x1274   :  { %v807_v42 = vpop.f32.mrf.mxu3 }
0x1275   :  { %v808_v43 = vadd.f32 %v925_v22, %v807_v42 }
0x1277   :  { %821 = vst [vmem:[#allocation14 + $0x20] sm:$0xff] %v808_v43 }
0x127c   :  { %v809_v44 = vpop.f32.mrf.mxu3 }
0x127d   :  { %v810_v45 = vadd.f32 %v925_v22, %v809_v44 }
0x127f   :  { %822 = vst [vmem:[#allocation14 + $0x28] sm:$0xff] %v810_v45 }
0x12e1   :  { %v812_v46 = vpop.f32.mrf.mxu3 }
0x12e2   :  { %v813_v47 = vadd.f32 %v925_v22, %v812_v46 }
0x12e4   :  { %823 = vst [vmem:[#allocation14 + $0x30] sm:$0xff] %v813_v47 }
0x12e9   :  { %v814_v48 = vpop.f32.mrf.mxu3 }
0x12ea   :  { %v815_v49 = vadd.f32 %v925_v22, %v814_v48 }
0x12ec   :  { %824 = vst [vmem:[#allocation14 + $0x38] sm:$0xff] %v815_v49 }
0x12ed   :  { %837 = dma.vmem_to_hbm [thread:$0]  %s830_s20, 1024, %s832_s23, [#allocation8], %s1128_s24, %s1128_s24, %s1129_s25  }
0x12ee   :  { %1116 = dma.done.wait [#allocation8], 1024  }
0x12ef   :  { %1117 = vsyncadd [#allocation8], 4294966272 }
0x12f0   :  { %842 = vsyncpa [#allocation7], 1 }
0x12f1   :  { %843 = vsyncpa [#allocation10], 1 }
0x12f2   :  { %844 = vsyncpa [#allocation13], 1 }
0x12f3   :  { %845 = vsyncpa [#allocation8], 1 }

</bundles_post_ra>
